<compile_context>
chip_gen: v7x
topology: tpu7x:2x2x1
jax: 0.10.0
libtpu: 0.0.40
codegen_flags: <defaults>
</compile_context>

<pallas_src>
import functools

import jax
import jax.numpy as jnp
from jax.experimental import pallas as pl
from jax.experimental.pallas import tpu as pltpu


BLOCK_BUDGET = 2 * 1024 * 1024      # target bytes per pipelined block (~2 MiB)
VMEM_LIMIT = 32 * 1024 * 1024       # explicit scoped-VMEM limit (safe on v5e/v6e/v7x)


# ---------------------------------------------------------------------------
# kernels
# ---------------------------------------------------------------------------

def _pool_fc_kernel(x_ref, w1_ref, w2_ref, o_ref, acc_ref, *, inv_hw):
    """Global average pool over HW (lane axis) fused with FC->ReLU->FC->sigmoid.

    grid = (B, HW_tiles); HW is the reduction axis ("arbitrary"), B "parallel".
    The output block index is the same for every HW step, so it stays
    VMEM-resident while we accumulate into the f32 scratch.
    """
    hw = pl.program_id(1)

    @pl.when(hw == 0)
    def _():
        acc_ref[...] = jnp.zeros_like(acc_ref)

    # last-axis (cross-lane) sum; accumulate in f32 regardless of input dtype.
    acc_ref[...] += jnp.sum(x_ref[...].astype(jnp.float32), axis=-1)    # (1, C)

    @pl.when(hw == pl.num_programs(1) - 1)
    def _():
        pooled = acc_ref[...] * inv_hw                                   # (1, C)
        h = jnp.maximum(
            jnp.dot(pooled, w1_ref[...], preferred_element_type=jnp.float32), 0.0)
        s = jax.nn.sigmoid(
            jnp.dot(h, w2_ref[...], preferred_element_type=jnp.float32))
        o_ref[...] = s[:, None, :]                                       # (1, 1, C)


def _pool_kernel(x_ref, o_ref, acc_ref, *, inv_hw):
    """Pool-only fallback (C tiled); grid = (B, C_tiles, HW_tiles)."""
    hw = pl.program_id(2)

    @pl.when(hw == 0)
    def _():
        acc_ref[...] = jnp.zeros_like(acc_ref)

    acc_ref[...] += jnp.sum(x_ref[...].astype(jnp.float32), axis=-1)    # (1, tc)

    @pl.when(hw == pl.num_programs(2) - 1)
    def _():
        o_ref[...] = (acc_ref[...] * inv_hw)[:, None, :]                 # (1, 1, tc)


def _rescale_kernel(x_ref, s_ref, o_ref):
    """y = x * scale, with the per-(b, c) scale broadcast over the HW lanes."""
    o_ref[...] = (x_ref[...] * s_ref[...]).astype(o_ref.dtype)


# ---------------------------------------------------------------------------
# tile selection helpers
# ---------------------------------------------------------------------------

def _largest_divisor(n, step, cap):
    """Largest d <= cap with d % step == 0 and n % d == 0, else None."""
    best = None
    d = step
    top = min(n, cap)
    while d <= top:
        if n % d == 0:
            best = d
        d += step
    return best


def _largest_plain_divisor(n, cap):
    best = 1
    for d in range(1, min(n, cap) + 1):
        if n % d == 0:
            best = d
    return best


# ---------------------------------------------------------------------------
# wrapper
# ---------------------------------------------------------------------------

def channel_attention(x_nchw, w1, w2):
    """ChannelAttention forward.

    x_nchw : (B, C, H, W)
    w1     : (C, C//r)   (= PyTorch fc1.weight.T, so y = x @ w1)
    w2     : (C//r, C)   (= PyTorch fc2.weight.T)
    returns (B, C, H, W), same dtype as x.
    """
    B, C, H, W = x_nchw.shape
    HW = H * W
    Cr = w1.shape[1]
    w1 = w1.astype(jnp.float32)
    w2 = w2.astype(jnp.float32)

    x3 = x_nchw.reshape(B, C, HW)          # free view of NCHW: C sublanes, HW lanes
    itemsize = x3.dtype.itemsize
    inv_hw = 1.0 / float(HW)

    # ----------------------------------------------------------------- pool
    thw_p = _largest_divisor(HW, 128, max(BLOCK_BUDGET // (C * itemsize), 1)) or HW
    fuse_fc = C * thw_p * itemsize <= 2 * BLOCK_BUDGET
    tc_p = None
    if not fuse_fc:
        # HW has no suitable multiple-of-128 divisor and a full-C block is too
        # big: keep HW as the (full-extent) lane dim and tile C instead.
        tc_p = _largest_divisor(C, 128, max(BLOCK_BUDGET // (thw_p * itemsize), 1))
        if tc_p is None:
            fuse_fc = True   # C has no 128-multiple divisor either; accept a big block

    if fuse_fc:
        # pool + FC -> ReLU -> FC -> sigmoid fused; output is the (B, 1, C) scale.
        scale = pl.pallas_call(
            functools.partial(_pool_fc_kernel, inv_hw=inv_hw),
            out_shape=jax.ShapeDtypeStruct((B, 1, C), jnp.float32),
            grid=(B, HW // thw_p),
            in_specs=[pl.BlockSpec((1, C, thw_p), lambda b, h: (b, 0, h)),
                      pl.BlockSpec((C, Cr), lambda b, h: (0, 0)),
                      pl.BlockSpec((Cr, C), lambda b, h: (0, 0))],
            out_specs=pl.BlockSpec((1, 1, C), lambda b, h: (b, 0, 0)),
            scratch_shapes=[pltpu.VMEM((1, C), jnp.float32)],
            compiler_params=pltpu.CompilerParams(
                dimension_semantics=("parallel", "arbitrary"),
                vmem_limit_bytes=VMEM_LIMIT),
        )(x3, w1, w2)
    else:
        # TODO(synk): B == 1 with this fallback leaves only one parallel grid
        # unit for the pool pass on v7x; a 2-way HW split with partial sums
        # would recover the second TensorCore.
        pooled = pl.pallas_call(
            functools.partial(_pool_kernel, inv_hw=inv_hw),
            out_shape=jax.ShapeDtypeStruct((B, 1, C), jnp.float32),
            grid=(B, C // tc_p, HW // thw_p),
            in_specs=[pl.BlockSpec((1, tc_p, thw_p), lambda b, c, h: (b, c, h))],
            out_specs=pl.BlockSpec((1, 1, tc_p), lambda b, c, h: (b, 0, c)),
            scratch_shapes=[pltpu.VMEM((1, tc_p), jnp.float32)],
            compiler_params=pltpu.CompilerParams(
                dimension_semantics=("parallel", "parallel", "arbitrary"),
                vmem_limit_bytes=VMEM_LIMIT),
        )(x3)
        p = pooled.reshape(B, C)
        scale = jax.nn.sigmoid(jnp.maximum(p @ w1, 0.0) @ w2).reshape(B, 1, C)

    # per-(b, c) scale with C on the sublane axis (tiny B*C relayout).
    scale_col = jnp.swapaxes(scale, 1, 2)                    # (B, C, 1) f32

    # -------------------------------------------------------------- rescale
    thw_r = _largest_divisor(HW, 128, max(BLOCK_BUDGET // (8 * itemsize), 1)) or HW
    c_cap = max(BLOCK_BUDGET // (thw_r * itemsize), 1)
    tc_r = C if C <= c_cap else (_largest_divisor(C, 8, c_cap) or C)
    b_cap = max(BLOCK_BUDGET // (tc_r * thw_r * itemsize), 1)
    tb_r = B if B <= b_cap else _largest_plain_divisor(B, b_cap)

    y3 = pl.pallas_call(
        _rescale_kernel,
        out_shape=jax.ShapeDtypeStruct((B, C, HW), x3.dtype),
        grid=(B // tb_r, C // tc_r, HW // thw_r),
        in_specs=[pl.BlockSpec((tb_r, tc_r, thw_r), lambda b, c, h: (b, c, h)),
                  pl.BlockSpec((tb_r, tc_r, 1), lambda b, c, h: (b, c, 0))],
        out_specs=pl.BlockSpec((tb_r, tc_r, thw_r), lambda b, c, h: (b, c, h)),
        compiler_params=pltpu.CompilerParams(
            dimension_semantics=("parallel", "parallel", "parallel"),
            vmem_limit_bytes=VMEM_LIMIT),
    )(x3, scale_col)

    return y3.reshape(B, C, H, W)


# ---------------------------------------------------------------------------
# main
# ---------------------------------------------------------------------------

if __name__ == "__main__":
    key = jax.random.PRNGKey(0)
    kx, k1, k2 = jax.random.split(key, 3)

    # Small shapes consistent with the module: reduction=16 requires C >= 16.
    B, C, H, W = 2, 128, 16, 16
    reduction = 16
    Cr = C // reduction

    x = jax.random.normal(kx, (B, C, H, W), jnp.float32)
    # PyTorch nn.Linear(in, out, bias=False).weight has shape (out, in); y = x @ W^T.
    fc1_w = 0.05 * jax.random.normal(k1, (Cr, C), jnp.float32)   # Linear(C, C//r)
    fc2_w = 0.05 * jax.random.normal(k2, (C, Cr), jnp.float32)   # Linear(C//r, C)
    w1 = fc1_w.T                                                 # (C, Cr)
    w2 = fc2_w.T                                                 # (Cr, C)

    fwd = jax.jit(channel_attention)
    y = jax.block_until_ready(fwd(x, w1, w2))

    # pure-JAX reference check
    pooled_ref = jnp.mean(x, axis=(2, 3))                        # (B, C)
    s_ref = jax.nn.sigmoid(jnp.maximum(pooled_ref @ w1, 0.0) @ w2)
    y_ref = x * s_ref[:, :, None, None]

    assert y.shape == (B, C, H, W), y.shape
    assert bool(jnp.all(jnp.isfinite(y)))
    err = float(jnp.max(jnp.abs(y - y_ref)))
    assert err < 1e-4, f"max abs err {err}"
    print("KERNEL_OK")
</pallas_src>

<mosaic_0001>
module attributes {stable_mosaic.version = 11 : i64} {
  func.func @_pool_fc_kernel(%arg0: i32, %arg1: i32, %arg2: memref<1x128x256xf32, #tpu.memory_space<vmem>>, %arg3: memref<128x8xf32, #tpu.memory_space<vmem>>, %arg4: memref<8x128xf32, #tpu.memory_space<vmem>>, %arg5: memref<1x1x128xf32, #tpu.memory_space<vmem>>, %arg6: memref<1x128xf32, #tpu.memory_space<vmem>>) attributes {dimension_semantics = [#tpu.dimension_semantics<parallel>, #tpu.dimension_semantics<arbitrary>], iteration_bounds = array<i64: 2, 1>, scalar_prefetch = 0 : i64, scratch_operands = 1 : i64, tpu.core_type = #tpu.core_type<tc>, window_params = [{transform_indices = @transform_0, window_bounds = array<i64: 1, 128, 256>}, {pipeline_mode = #tpu.pipeline_mode<synchronous>, transform_indices = @transform_1, window_bounds = array<i64: 128, 8>}, {pipeline_mode = #tpu.pipeline_mode<synchronous>, transform_indices = @transform_2, window_bounds = array<i64: 8, 128>}, {transform_indices = @transform_3, window_bounds = array<i64: 1, 1, 128>}]} {
    %c0_i32 = arith.constant 0 : i32
    %0 = arith.cmpi eq, %arg1, %c0_i32 : i32
    %1 = arith.extui %0 : i1 to i32
    %c0_i32_0 = arith.constant 0 : i32
    %2 = arith.cmpi ne, %1, %c0_i32_0 : i32
    scf.if %2 {
      %cst_9 = arith.constant 0.000000e+00 : f32
      %11 = vector.broadcast %cst_9 : f32 to vector<1x128xf32>
      %c0_10 = arith.constant 0 : index
      %c0_11 = arith.constant 0 : index
      %12 = vector.load %arg6[%c0_10, %c0_11] : memref<1x128xf32, #tpu.memory_space<vmem>>, vector<1x128xf32>
      tpu.vector_store %arg6[%c0_10, %c0_11], %11 {strides = array<i32>} : memref<1x128xf32, #tpu.memory_space<vmem>>, vector<1x128xf32>,
    } else {
    }
    %c0 = arith.constant 0 : index
    %c0_1 = arith.constant 0 : index
    %3 = vector.load %arg6[%c0, %c0_1] : memref<1x128xf32, #tpu.memory_space<vmem>>, vector<1x128xf32>
    %c0_2 = arith.constant 0 : index
    %c0_3 = arith.constant 0 : index
    %c0_4 = arith.constant 0 : index
    %4 = vector.load %arg2[%c0_2, %c0_3, %c0_4] : memref<1x128x256xf32, #tpu.memory_space<vmem>>, vector<1x128x256xf32>
    %cst = arith.constant dense<0.000000e+00> : vector<1x128xf32>
    %5 = vector.multi_reduction <add>, %4, %cst [2] : vector<1x128x256xf32> to vector<1x128xf32>
    %6 = arith.addf %3, %5 : vector<1x128xf32>
    %c0_5 = arith.constant 0 : index
    %c0_6 = arith.constant 0 : index
    %7 = vector.load %arg6[%c0_5, %c0_6] : memref<1x128xf32, #tpu.memory_space<vmem>>, vector<1x128xf32>
    tpu.vector_store %arg6[%c0_5, %c0_6], %6 {strides = array<i32>} : memref<1x128xf32, #tpu.memory_space<vmem>>, vector<1x128xf32>,
    %c0_i32_7 = arith.constant 0 : i32
    %8 = arith.cmpi eq, %arg1, %c0_i32_7 : i32
    %9 = arith.extui %8 : i1 to i32
    %c0_i32_8 = arith.constant 0 : i32
    %10 = arith.cmpi ne, %9, %c0_i32_8 : i32
    scf.if %10 {
      %c0_9 = arith.constant 0 : index
      %c0_10 = arith.constant 0 : index
      %11 = vector.load %arg6[%c0_9, %c0_10] : memref<1x128xf32, #tpu.memory_space<vmem>>, vector<1x128xf32>
      %cst_11 = arith.constant 3.906250e-03 : f32
      %12 = vector.broadcast %cst_11 : f32 to vector<1x128xf32>
      %13 = arith.mulf %11, %12 : vector<1x128xf32>
      %c0_12 = arith.constant 0 : index
      %c0_13 = arith.constant 0 : index
      %14 = vector.load %arg3[%c0_12, %c0_13] : memref<128x8xf32, #tpu.memory_space<vmem>>, vector<128x8xf32>
      %cst_14 = arith.constant dense<0.000000e+00> : vector<1x8xf32>
      %15 = tpu.matmul %13, %14, %cst_14 {dimension_numbers = #tpu.dot_dimension_numbers<[1], [0], [0], [1], [0, 0, 1, 1], [], []>} : vector<1x128xf32>, vector<128x8xf32>, vector<1x8xf32> -> vector<1x8xf32>
      %cst_15 = arith.constant 0.000000e+00 : f32
      %16 = vector.broadcast %cst_15 : f32 to vector<1x8xf32>
      %17 = arith.maximumf %15, %16 : vector<1x8xf32>
      %c0_16 = arith.constant 0 : index
      %c0_17 = arith.constant 0 : index
      %18 = vector.load %arg4[%c0_16, %c0_17] : memref<8x128xf32, #tpu.memory_space<vmem>>, vector<8x128xf32>
      %cst_18 = arith.constant dense<0.000000e+00> : vector<1x128xf32>
      %19 = tpu.matmul %17, %18, %cst_18 {dimension_numbers = #tpu.dot_dimension_numbers<[1], [0], [0], [1], [0, 0, 1, 1], [], []>} : vector<1x8xf32>, vector<8x128xf32>, vector<1x128xf32> -> vector<1x128xf32>
      %20 = arith.negf %19 : vector<1x128xf32>
      %21 = math.exp %20 : vector<1x128xf32>
      %cst_19 = arith.constant 1.000000e+00 : f32
      %22 = vector.broadcast %cst_19 : f32 to vector<1x128xf32>
      %23 = arith.addf %22, %21 : vector<1x128xf32>
      %24 = arith.divf %22, %23 : vector<1x128xf32>
      %25 = vector.shape_cast %24 : vector<1x128xf32> to vector<1x1x128xf32>
      %c0_20 = arith.constant 0 : index
      %c0_21 = arith.constant 0 : index
      %c0_22 = arith.constant 0 : index
      %26 = vector.load %arg5[%c0_20, %c0_21, %c0_22] : memref<1x1x128xf32, #tpu.memory_space<vmem>>, vector<1x1x128xf32>
      tpu.vector_store %arg5[%c0_20, %c0_21, %c0_22], %25 {strides = array<i32>} : memref<1x1x128xf32, #tpu.memory_space<vmem>>, vector<1x1x128xf32>,
    } else {
    }
    return
  }
  func.func @transform_0(%arg0: i32, %arg1: i32) -> (i32, i32, i32) {
    %c0_i32 = arith.constant 0 : i32
    %c0_i32_0 = arith.constant 0 : i32
    return %arg0, %c0_i32, %arg1 : i32, i32, i32
  }
  func.func @transform_1(%arg0: i32, %arg1: i32) -> (i32, i32) {
    %c0_i32 = arith.constant 0 : i32
    %c0_i32_0 = arith.constant 0 : i32
    %c0_i32_1 = arith.constant 0 : i32
    return %c0_i32, %c0_i32_0 : i32, i32
  }
  func.func @transform_2(%arg0: i32, %arg1: i32) -> (i32, i32) {
    %c0_i32 = arith.constant 0 : i32
    %c0_i32_0 = arith.constant 0 : i32
    %c0_i32_1 = arith.constant 0 : i32
    return %c0_i32, %c0_i32_0 : i32, i32
  }
  func.func @transform_3(%arg0: i32, %arg1: i32) -> (i32, i32, i32) {
    %c0_i32 = arith.constant 0 : i32
    %c0_i32_0 = arith.constant 0 : i32
    %c0_i32_1 = arith.constant 0 : i32
    return %arg0, %c0_i32, %c0_i32_0 : i32, i32, i32
  }
}

module attributes {stable_mosaic.version = 11 : i64} {
  func.func @_rescale_kernel(%arg0: i32, %arg1: i32, %arg2: i32, %arg3: memref<2x128x256xf32, #tpu.memory_space<vmem>>, %arg4: memref<2x128x1xf32, #tpu.memory_space<vmem>>, %arg5: memref<2x128x256xf32, #tpu.memory_space<vmem>>) attributes {dimension_semantics = [#tpu.dimension_semantics<parallel>, #tpu.dimension_semantics<parallel>, #tpu.dimension_semantics<parallel>], iteration_bounds = array<i64: 1, 1, 1>, scalar_prefetch = 0 : i64, scratch_operands = 0 : i64, tpu.core_type = #tpu.core_type<tc>, window_params = [{transform_indices = @transform_0, window_bounds = array<i64: 2, 128, 256>}, {transform_indices = @transform_1, window_bounds = array<i64: 2, 128, 1>}, {transform_indices = @transform_2, window_bounds = array<i64: 2, 128, 256>}]} {
    %c0 = arith.constant 0 : index
    %c0_0 = arith.constant 0 : index
    %c0_1 = arith.constant 0 : index
    %0 = vector.load %arg3[%c0, %c0_0, %c0_1] : memref<2x128x256xf32, #tpu.memory_space<vmem>>, vector<2x128x256xf32>
    %c0_2 = arith.constant 0 : index
    %c0_3 = arith.constant 0 : index
    %c0_4 = arith.constant 0 : index
    %1 = vector.load %arg4[%c0_2, %c0_3, %c0_4] : memref<2x128x1xf32, #tpu.memory_space<vmem>>, vector<2x128x1xf32>
    %2 = vector.broadcast %1 : vector<2x128x1xf32> to vector<2x128x256xf32>
    %3 = arith.mulf %0, %2 : vector<2x128x256xf32>
    %c0_5 = arith.constant 0 : index
    %c0_6 = arith.constant 0 : index
    %c0_7 = arith.constant 0 : index
    %4 = vector.load %arg5[%c0_5, %c0_6, %c0_7] : memref<2x128x256xf32, #tpu.memory_space<vmem>>, vector<2x128x256xf32>
    tpu.vector_store %arg5[%c0_5, %c0_6, %c0_7], %3 {strides = array<i32>} : memref<2x128x256xf32, #tpu.memory_space<vmem>>, vector<2x128x256xf32>,
    return
  }
  func.func @transform_0(%arg0: i32, %arg1: i32, %arg2: i32) -> (i32, i32, i32) {
    %c0_i32 = arith.constant 0 : i32
    return %arg0, %arg1, %arg2 : i32, i32, i32
  }
  func.func @transform_1(%arg0: i32, %arg1: i32, %arg2: i32) -> (i32, i32, i32) {
    %c0_i32 = arith.constant 0 : i32
    %c0_i32_0 = arith.constant 0 : i32
    return %arg0, %arg1, %c0_i32 : i32, i32, i32
  }
  func.func @transform_2(%arg0: i32, %arg1: i32, %arg2: i32) -> (i32, i32, i32) {
    %c0_i32 = arith.constant 0 : i32
    return %arg0, %arg1, %arg2 : i32, i32, i32
  }
}

</mosaic_0001>

<bundles_post_ra>
// kernel: channel_attention.3
= control target key start
LH: loop header
LB: loop body
LE: loop exit
PB: predicated region body
PF: predicated region fallthrough
CT: control target
= control target key end

     0   :  { %v402_v0 = vmov 0   ;;  %s898_s1 = inlined_call_operand.vmem [shape: f32[2,128,1], index: 1, kind: input, shape index: {}]   ;;  %s899_s0 = inlined_call_operand.vmem [shape: f32[2,128,256], index: 0, kind: input, shape index: {}]   ;;  %s900_s2 = inlined_call_operand.vmem [shape: f32[2,128,256], index: 2, kind: output, shape index: {}]  }
   0x1   :  { %401 = vset.pattern.permute.xlu1 %v402_v0  ;;  %400 = vset.pattern.permute.xlu0 %v402_v0  ;;  %v77_v1 = vld [vmem:[%s898_s1 + $0x10] sm:$0xff]  ;;  %v75_v2 = vld [vmem:[%s898_s1] sm:$0xff]  ;;  %v78_v3 = vld [vmem:[%s898_s1 + $0x18] sm:$0xff] }
   0x2   :  { %119 = vperm.xlu1 %401, %v77_v1   ;;  %109 = vperm.xlu0 %400, %v75_v2   ;;  %v76_v4 = vld [vmem:[%s898_s1 + $0x8] sm:$0xff]  ;;  %v79_v6 = vld [vmem:[%s898_s1 + $0x20] sm:$0xff]  ;;  %v82_v7 = vld [vmem:[%s898_s1 + $0x38] sm:$0xff] }
   0x3   :  { %v80_v5 = vld [vmem:[%s898_s1 + $0x28] sm:$0xff]  ;;  %v81_v8 = vld [vmem:[%s898_s1 + $0x30] sm:$0xff]  ;;  %v83_v10 = vld [vmem:[%s898_s1 + $0x40] sm:$0xff] }
   0x4   :  { %v84_v9 = vld [vmem:[%s898_s1 + $0x48] sm:$0xff]  ;;  %v86_v11 = vld [vmem:[%s898_s1 + $0x58] sm:$0xff]  ;;  %v85_v12 = vld [vmem:[%s898_s1 + $0x50] sm:$0xff] }
   0x5   :  { %v88_v13 = vld [vmem:[%s898_s1 + $0x68] sm:$0xff]  ;;  %v87_v14 = vld [vmem:[%s898_s1 + $0x60] sm:$0xff]  ;;  %v90_v15 = vld [vmem:[%s898_s1 + $0x78] sm:$0xff] }
   0x6   :  { %124 = vperm.xlu1 %401, %v78_v3   ;;  %114 = vperm.xlu0 %400, %v76_v4   ;;  %v89_v16 = vld [vmem:[%s898_s1 + $0x70] sm:$0xff]  ;;  %v92_v17 = vld [vmem:[%s898_s1 + $0x88] sm:$0xff]  ;;  %v91_v18 = vld [vmem:[%s898_s1 + $0x80] sm:$0xff] }
   0x7   :  { %v94_v19 = vld [vmem:[%s898_s1 + $0x98] sm:$0xff]  ;;  %v93_v20 = vld [vmem:[%s898_s1 + $0x90] sm:$0xff]  ;;  %v96_v21 = vld [vmem:[%s898_s1 + $0xa8] sm:$0xff] }
   0x8   :  { %v95_v22 = vld [vmem:[%s898_s1 + $0xa0] sm:$0xff]  ;;  %v98_v23 = vld [vmem:[%s898_s1 + $0xb8] sm:$0xff]  ;;  %v97_v24 = vld [vmem:[%s898_s1 + $0xb0] sm:$0xff] }
   0x9   :  { %v100_v25 = vld [vmem:[%s898_s1 + $0xc8] sm:$0xff]  ;;  %v99_v26 = vld [vmem:[%s898_s1 + $0xc0] sm:$0xff]  ;;  %v102_v27 = vld [vmem:[%s898_s1 + $0xd8] sm:$0xff] }
   0xa   :  { %134 = vperm.xlu1 %401, %v80_v5   ;;  %129 = vperm.xlu0 %400, %v79_v6   ;;  %v101_v28 = vld [vmem:[%s898_s1 + $0xd0] sm:$0xff]  ;;  %v104_v29 = vld [vmem:[%s898_s1 + $0xe8] sm:$0xff]  ;;  %v103_v30 = vld [vmem:[%s898_s1 + $0xe0] sm:$0xff] }
   0xb   :  { %v106_v31 = vld [vmem:[%s898_s1 + $0xf8] sm:$0xff]  ;;  %v105_v32 = vld [vmem:[%s898_s1 + $0xf0] sm:$0xff]  ;;  %v15_v33 = vld [vmem:[%s899_s0 + $0x20] sm:$0xff] }
   0xc   :  { %v16_v34 = vld [vmem:[%s899_s0 + $0x28] sm:$0xff]  ;;  %v11_v35 = vld [vmem:[%s899_s0] sm:$0xff]  ;;  %v17_v43 = vld [vmem:[%s899_s0 + $0x30] sm:$0xff] }
   0xd   :  { %v12_v36 = vld [vmem:[%s899_s0 + $0x8] sm:$0xff]  ;;  %v18_v44 = vld [vmem:[%s899_s0 + $0x38] sm:$0xff]  ;;  %v13_v45 = vld [vmem:[%s899_s0 + $0x10] sm:$0xff] }
   0xe   :  { %144 = vperm.xlu1 %401, %v82_v7   ;;  %139 = vperm.xlu0 %400, %v81_v8   ;;  %v14_v46 = vld [vmem:[%s899_s0 + $0x18] sm:$0xff]  ;;  %v21_v53 = vld [vmem:[%s899_s0 + $0x50] sm:$0xff]  ;;  %v19_v55 = vld [vmem:[%s899_s0 + $0x40] sm:$0xff] }
   0xf   :  { %v22_v54 = vld [vmem:[%s899_s0 + $0x58] sm:$0xff]  ;;  %v20_v56 = vld [vmem:[%s899_s0 + $0x48] sm:$0xff]  ;;  %v25_v63 = vld [vmem:[%s899_s0 + $0x70] sm:$0xff] }
  0x10   :  { %v26_v0 = vld [vmem:[%s899_s0 + $0x78] sm:$0xff]  ;;  %v23_v1 = vld [vmem:[%s899_s0 + $0x60] sm:$0xff]  ;;  %v24_v2 = vld [vmem:[%s899_s0 + $0x68] sm:$0xff] }
  0x12   :  { %154 = vperm.xlu1 %401, %v84_v9   ;;  %149 = vperm.xlu0 %400, %v83_v10   ;;  %v29_v9 = vld [vmem:[%s899_s0 + $0x90] sm:$0xff]  ;;  %v30_v10 = vld [vmem:[%s899_s0 + $0x98] sm:$0xff] }
  0x16   :  { %164 = vperm.xlu1 %401, %v86_v11   ;;  %159 = vperm.xlu0 %400, %v85_v12   ;;  %v27_v11 = vld [vmem:[%s899_s0 + $0x80] sm:$0xff]  ;;  %v28_v12 = vld [vmem:[%s899_s0 + $0x88] sm:$0xff] }
  0x1a   :  { %174 = vperm.xlu1 %401, %v88_v13   ;;  %169 = vperm.xlu0 %400, %v87_v14  }
  0x1e   :  { %184 = vperm.xlu1 %401, %v90_v15   ;;  %179 = vperm.xlu0 %400, %v89_v16  }
  0x22   :  { %194 = vperm.xlu1 %401, %v92_v17   ;;  %189 = vperm.xlu0 %400, %v91_v18  }
  0x26   :  { %204 = vperm.xlu1 %401, %v94_v19   ;;  %199 = vperm.xlu0 %400, %v93_v20   ;;  %v33_v19 = vld [vmem:[%s899_s0 + $0xb0] sm:$0xff]  ;;  %v34_v20 = vld [vmem:[%s899_s0 + $0xb8] sm:$0xff] }
  0x2a   :  { %214 = vperm.xlu1 %401, %v96_v21   ;;  %209 = vperm.xlu0 %400, %v95_v22   ;;  %v31_v21 = vld [vmem:[%s899_s0 + $0xa0] sm:$0xff]  ;;  %v32_v22 = vld [vmem:[%s899_s0 + $0xa8] sm:$0xff] }
  0x2e   :  { %224 = vperm.xlu1 %401, %v98_v23   ;;  %219 = vperm.xlu0 %400, %v97_v24  }
  0x32   :  { %234 = vperm.xlu1 %401, %v100_v25   ;;  %229 = vperm.xlu0 %400, %v99_v26  }
  0x36   :  { %244 = vperm.xlu1 %401, %v102_v27   ;;  %239 = vperm.xlu0 %400, %v101_v28  }
  0x3a   :  { %254 = vperm.xlu1 %401, %v104_v29   ;;  %249 = vperm.xlu0 %400, %v103_v30   ;;  %v37_v29 = vld [vmem:[%s899_s0 + $0xd0] sm:$0xff]  ;;  %v38_v30 = vld [vmem:[%s899_s0 + $0xd8] sm:$0xff] }
  0x3e   :  { %264 = vperm.xlu1 %401, %v106_v31   ;;  %259 = vperm.xlu0 %400, %v105_v32   ;;  %v35_v31 = vld [vmem:[%s899_s0 + $0xc0] sm:$0xff]  ;;  %v36_v32 = vld [vmem:[%s899_s0 + $0xc8] sm:$0xff] }
  0x81   :  { %v120_v37 = vpop.permute.xlu1 %119  ;;  %v110_v38 = vpop.permute.xlu0 %109 }
  0x82   :  { %v271_v39 = vmul.f32 %v120_v37, %v15_v33  ;;  %v272_v40 = vmul.f32 %v120_v37, %v16_v34  ;;  %v267_v41 = vmul.f32 %v110_v38, %v11_v35  ;;  %v268_v42 = vmul.f32 %v110_v38, %v12_v36 }
  0x84   :  { %335 = vst [vmem:[%s900_s2 + $0x20] sm:$0xff] %v271_v39  ;;  %336 = vst [vmem:[%s900_s2 + $0x28] sm:$0xff] %v272_v40  ;;  %v41_v39 = vld [vmem:[%s899_s0 + $0xf0] sm:$0xff]  ;;  %v42_v40 = vld [vmem:[%s899_s0 + $0xf8] sm:$0xff] }
  0x85   :  { %331 = vst [vmem:[%s900_s2] sm:$0xff] %v267_v41  ;;  %332 = vst [vmem:[%s900_s2 + $0x8] sm:$0xff] %v268_v42  ;;  %v125_v47 = vpop.permute.xlu1 %124  ;;  %v115_v48 = vpop.permute.xlu0 %114  ;;  %v39_v41 = vld [vmem:[%s899_s0 + $0xe0] sm:$0xff]  ;;  %v40_v42 = vld [vmem:[%s899_s0 + $0xe8] sm:$0xff] }
  0x86   :  { %v273_v49 = vmul.f32 %v125_v47, %v17_v43  ;;  %v274_v50 = vmul.f32 %v125_v47, %v18_v44  ;;  %v269_v51 = vmul.f32 %v115_v48, %v13_v45  ;;  %v270_v52 = vmul.f32 %v115_v48, %v14_v46 }
  0x88   :  { %337 = vst [vmem:[%s900_s2 + $0x30] sm:$0xff] %v273_v49  ;;  %338 = vst [vmem:[%s900_s2 + $0x38] sm:$0xff] %v274_v50  ;;  %v45_v49 = vld [vmem:[%s899_s0 + $0x110] sm:$0xff]  ;;  %v46_v50 = vld [vmem:[%s899_s0 + $0x118] sm:$0xff] }
  0x89   :  { %333 = vst [vmem:[%s900_s2 + $0x10] sm:$0xff] %v269_v51  ;;  %334 = vst [vmem:[%s900_s2 + $0x18] sm:$0xff] %v270_v52  ;;  %v135_v57 = vpop.permute.xlu1 %134  ;;  %v130_v58 = vpop.permute.xlu0 %129  ;;  %v43_v51 = vld [vmem:[%s899_s0 + $0x100] sm:$0xff]  ;;  %v44_v52 = vld [vmem:[%s899_s0 + $0x108] sm:$0xff] }
  0x8a   :  { %v277_v59 = vmul.f32 %v135_v57, %v21_v53  ;;  %v278_v60 = vmul.f32 %v135_v57, %v22_v54  ;;  %v275_v61 = vmul.f32 %v130_v58, %v19_v55  ;;  %v276_v62 = vmul.f32 %v130_v58, %v20_v56 }
  0x8c   :  { %341 = vst [vmem:[%s900_s2 + $0x50] sm:$0xff] %v277_v59  ;;  %342 = vst [vmem:[%s900_s2 + $0x58] sm:$0xff] %v278_v60  ;;  %v49_v59 = vld [vmem:[%s899_s0 + $0x130] sm:$0xff]  ;;  %v50_v60 = vld [vmem:[%s899_s0 + $0x138] sm:$0xff] }
  0x8d   :  { %339 = vst [vmem:[%s900_s2 + $0x40] sm:$0xff] %v275_v61  ;;  %340 = vst [vmem:[%s900_s2 + $0x48] sm:$0xff] %v276_v62  ;;  %v145_v3 = vpop.permute.xlu1 %144  ;;  %v140_v4 = vpop.permute.xlu0 %139  ;;  %v47_v61 = vld [vmem:[%s899_s0 + $0x120] sm:$0xff]  ;;  %v48_v62 = vld [vmem:[%s899_s0 + $0x128] sm:$0xff] }
  0x8e   :  { %v281_v5 = vmul.f32 %v145_v3, %v25_v63  ;;  %v282_v6 = vmul.f32 %v145_v3, %v26_v0  ;;  %v279_v7 = vmul.f32 %v140_v4, %v23_v1  ;;  %v280_v8 = vmul.f32 %v140_v4, %v24_v2 }
  0x90   :  { %345 = vst [vmem:[%s900_s2 + $0x70] sm:$0xff] %v281_v5  ;;  %346 = vst [vmem:[%s900_s2 + $0x78] sm:$0xff] %v282_v6  ;;  %v53_v5 = vld [vmem:[%s899_s0 + $0x150] sm:$0xff]  ;;  %v54_v6 = vld [vmem:[%s899_s0 + $0x158] sm:$0xff] }
  0x91   :  { %343 = vst [vmem:[%s900_s2 + $0x60] sm:$0xff] %v279_v7  ;;  %344 = vst [vmem:[%s900_s2 + $0x68] sm:$0xff] %v280_v8  ;;  %v155_v13 = vpop.permute.xlu1 %154  ;;  %v150_v14 = vpop.permute.xlu0 %149  ;;  %v51_v7 = vld [vmem:[%s899_s0 + $0x140] sm:$0xff]  ;;  %v52_v8 = vld [vmem:[%s899_s0 + $0x148] sm:$0xff] }
  0x92   :  { %v285_v15 = vmul.f32 %v155_v13, %v29_v9  ;;  %v286_v16 = vmul.f32 %v155_v13, %v30_v10  ;;  %v283_v17 = vmul.f32 %v150_v14, %v27_v11  ;;  %v284_v18 = vmul.f32 %v150_v14, %v28_v12 }
  0x94   :  { %349 = vst [vmem:[%s900_s2 + $0x90] sm:$0xff] %v285_v15  ;;  %350 = vst [vmem:[%s900_s2 + $0x98] sm:$0xff] %v286_v16  ;;  %v57_v15 = vld [vmem:[%s899_s0 + $0x170] sm:$0xff]  ;;  %v58_v16 = vld [vmem:[%s899_s0 + $0x178] sm:$0xff] }
  0x95   :  { %347 = vst [vmem:[%s900_s2 + $0x80] sm:$0xff] %v283_v17  ;;  %348 = vst [vmem:[%s900_s2 + $0x88] sm:$0xff] %v284_v18  ;;  %v165_v23 = vpop.permute.xlu1 %164  ;;  %v160_v24 = vpop.permute.xlu0 %159  ;;  %v55_v17 = vld [vmem:[%s899_s0 + $0x160] sm:$0xff]  ;;  %v56_v18 = vld [vmem:[%s899_s0 + $0x168] sm:$0xff] }
  0x96   :  { %v289_v25 = vmul.f32 %v165_v23, %v33_v19  ;;  %v290_v26 = vmul.f32 %v165_v23, %v34_v20  ;;  %v287_v27 = vmul.f32 %v160_v24, %v31_v21  ;;  %v288_v28 = vmul.f32 %v160_v24, %v32_v22 }
  0x98   :  { %353 = vst [vmem:[%s900_s2 + $0xb0] sm:$0xff] %v289_v25  ;;  %354 = vst [vmem:[%s900_s2 + $0xb8] sm:$0xff] %v290_v26  ;;  %v61_v25 = vld [vmem:[%s899_s0 + $0x190] sm:$0xff]  ;;  %v62_v26 = vld [vmem:[%s899_s0 + $0x198] sm:$0xff] }
  0x99   :  { %351 = vst [vmem:[%s900_s2 + $0xa0] sm:$0xff] %v287_v27  ;;  %352 = vst [vmem:[%s900_s2 + $0xa8] sm:$0xff] %v288_v28  ;;  %v175_v33 = vpop.permute.xlu1 %174  ;;  %v170_v34 = vpop.permute.xlu0 %169  ;;  %v59_v27 = vld [vmem:[%s899_s0 + $0x180] sm:$0xff]  ;;  %v60_v28 = vld [vmem:[%s899_s0 + $0x188] sm:$0xff] }
  0x9a   :  { %v293_v35 = vmul.f32 %v175_v33, %v37_v29  ;;  %v294_v36 = vmul.f32 %v175_v33, %v38_v30  ;;  %v291_v37 = vmul.f32 %v170_v34, %v35_v31  ;;  %v292_v38 = vmul.f32 %v170_v34, %v36_v32 }
  0x9c   :  { %357 = vst [vmem:[%s900_s2 + $0xd0] sm:$0xff] %v293_v35  ;;  %358 = vst [vmem:[%s900_s2 + $0xd8] sm:$0xff] %v294_v36  ;;  %v65_v35 = vld [vmem:[%s899_s0 + $0x1b0] sm:$0xff]  ;;  %v66_v36 = vld [vmem:[%s899_s0 + $0x1b8] sm:$0xff] }
  0x9d   :  { %355 = vst [vmem:[%s900_s2 + $0xc0] sm:$0xff] %v291_v37  ;;  %356 = vst [vmem:[%s900_s2 + $0xc8] sm:$0xff] %v292_v38  ;;  %v185_v43 = vpop.permute.xlu1 %184  ;;  %v180_v44 = vpop.permute.xlu0 %179  ;;  %v63_v37 = vld [vmem:[%s899_s0 + $0x1a0] sm:$0xff]  ;;  %v64_v38 = vld [vmem:[%s899_s0 + $0x1a8] sm:$0xff] }
  0x9e   :  { %v297_v45 = vmul.f32 %v185_v43, %v41_v39  ;;  %v298_v46 = vmul.f32 %v185_v43, %v42_v40  ;;  %v295_v47 = vmul.f32 %v180_v44, %v39_v41  ;;  %v296_v48 = vmul.f32 %v180_v44, %v40_v42 }
  0xa0   :  { %361 = vst [vmem:[%s900_s2 + $0xf0] sm:$0xff] %v297_v45  ;;  %362 = vst [vmem:[%s900_s2 + $0xf8] sm:$0xff] %v298_v46  ;;  %v69_v45 = vld [vmem:[%s899_s0 + $0x1d0] sm:$0xff]  ;;  %v70_v46 = vld [vmem:[%s899_s0 + $0x1d8] sm:$0xff] }
  0xa1   :  { %359 = vst [vmem:[%s900_s2 + $0xe0] sm:$0xff] %v295_v47  ;;  %360 = vst [vmem:[%s900_s2 + $0xe8] sm:$0xff] %v296_v48  ;;  %v195_v53 = vpop.permute.xlu1 %194  ;;  %v190_v54 = vpop.permute.xlu0 %189  ;;  %v67_v47 = vld [vmem:[%s899_s0 + $0x1c0] sm:$0xff]  ;;  %v68_v48 = vld [vmem:[%s899_s0 + $0x1c8] sm:$0xff] }
  0xa2   :  { %v301_v55 = vmul.f32 %v195_v53, %v45_v49  ;;  %v302_v56 = vmul.f32 %v195_v53, %v46_v50  ;;  %v299_v57 = vmul.f32 %v190_v54, %v43_v51  ;;  %v300_v58 = vmul.f32 %v190_v54, %v44_v52 }
  0xa4   :  { %365 = vst [vmem:[%s900_s2 + $0x110] sm:$0xff] %v301_v55  ;;  %366 = vst [vmem:[%s900_s2 + $0x118] sm:$0xff] %v302_v56  ;;  %v73_v55 = vld [vmem:[%s899_s0 + $0x1f0] sm:$0xff]  ;;  %v74_v56 = vld [vmem:[%s899_s0 + $0x1f8] sm:$0xff] }
  0xa5   :  { %363 = vst [vmem:[%s900_s2 + $0x100] sm:$0xff] %v299_v57  ;;  %364 = vst [vmem:[%s900_s2 + $0x108] sm:$0xff] %v300_v58  ;;  %v205_v63 = vpop.permute.xlu1 %204  ;;  %v200_v0 = vpop.permute.xlu0 %199  ;;  %v71_v57 = vld [vmem:[%s899_s0 + $0x1e0] sm:$0xff]  ;;  %v72_v58 = vld [vmem:[%s899_s0 + $0x1e8] sm:$0xff] }
  0xa6   :  { %v305_v1 = vmul.f32 %v205_v63, %v49_v59  ;;  %v306_v2 = vmul.f32 %v205_v63, %v50_v60  ;;  %v303_v3 = vmul.f32 %v200_v0, %v47_v61  ;;  %v304_v4 = vmul.f32 %v200_v0, %v48_v62 }
  0xa8   :  { %369 = vst [vmem:[%s900_s2 + $0x130] sm:$0xff] %v305_v1  ;;  %370 = vst [vmem:[%s900_s2 + $0x138] sm:$0xff] %v306_v2 }
  0xa9   :  { %367 = vst [vmem:[%s900_s2 + $0x120] sm:$0xff] %v303_v3  ;;  %368 = vst [vmem:[%s900_s2 + $0x128] sm:$0xff] %v304_v4  ;;  %v215_v9 = vpop.permute.xlu1 %214  ;;  %v210_v10 = vpop.permute.xlu0 %209 }
  0xaa   :  { %v309_v11 = vmul.f32 %v215_v9, %v53_v5  ;;  %v310_v12 = vmul.f32 %v215_v9, %v54_v6  ;;  %v307_v13 = vmul.f32 %v210_v10, %v51_v7  ;;  %v308_v14 = vmul.f32 %v210_v10, %v52_v8 }
  0xac   :  { %373 = vst [vmem:[%s900_s2 + $0x150] sm:$0xff] %v309_v11  ;;  %374 = vst [vmem:[%s900_s2 + $0x158] sm:$0xff] %v310_v12 }
  0xad   :  { %371 = vst [vmem:[%s900_s2 + $0x140] sm:$0xff] %v307_v13  ;;  %372 = vst [vmem:[%s900_s2 + $0x148] sm:$0xff] %v308_v14  ;;  %v225_v19 = vpop.permute.xlu1 %224  ;;  %v220_v20 = vpop.permute.xlu0 %219 }
  0xae   :  { %v313_v21 = vmul.f32 %v225_v19, %v57_v15  ;;  %v314_v22 = vmul.f32 %v225_v19, %v58_v16  ;;  %v311_v23 = vmul.f32 %v220_v20, %v55_v17  ;;  %v312_v24 = vmul.f32 %v220_v20, %v56_v18 }
  0xb0   :  { %377 = vst [vmem:[%s900_s2 + $0x170] sm:$0xff] %v313_v21  ;;  %378 = vst [vmem:[%s900_s2 + $0x178] sm:$0xff] %v314_v22 }
  0xb1   :  { %375 = vst [vmem:[%s900_s2 + $0x160] sm:$0xff] %v311_v23  ;;  %376 = vst [vmem:[%s900_s2 + $0x168] sm:$0xff] %v312_v24  ;;  %v235_v29 = vpop.permute.xlu1 %234  ;;  %v230_v30 = vpop.permute.xlu0 %229 }
  0xb2   :  { %v317_v31 = vmul.f32 %v235_v29, %v61_v25  ;;  %v318_v32 = vmul.f32 %v235_v29, %v62_v26  ;;  %v315_v33 = vmul.f32 %v230_v30, %v59_v27  ;;  %v316_v34 = vmul.f32 %v230_v30, %v60_v28 }
  0xb4   :  { %381 = vst [vmem:[%s900_s2 + $0x190] sm:$0xff] %v317_v31  ;;  %382 = vst [vmem:[%s900_s2 + $0x198] sm:$0xff] %v318_v32 }
  0xb5   :  { %379 = vst [vmem:[%s900_s2 + $0x180] sm:$0xff] %v315_v33  ;;  %380 = vst [vmem:[%s900_s2 + $0x188] sm:$0xff] %v316_v34  ;;  %v245_v39 = vpop.permute.xlu1 %244  ;;  %v240_v40 = vpop.permute.xlu0 %239 }
  0xb6   :  { %v321_v41 = vmul.f32 %v245_v39, %v65_v35  ;;  %v322_v42 = vmul.f32 %v245_v39, %v66_v36  ;;  %v319_v43 = vmul.f32 %v240_v40, %v63_v37  ;;  %v320_v44 = vmul.f32 %v240_v40, %v64_v38 }
  0xb8   :  { %385 = vst [vmem:[%s900_s2 + $0x1b0] sm:$0xff] %v321_v41  ;;  %386 = vst [vmem:[%s900_s2 + $0x1b8] sm:$0xff] %v322_v42 }
  0xb9   :  { %383 = vst [vmem:[%s900_s2 + $0x1a0] sm:$0xff] %v319_v43  ;;  %384 = vst [vmem:[%s900_s2 + $0x1a8] sm:$0xff] %v320_v44  ;;  %v255_v49 = vpop.permute.xlu1 %254  ;;  %v250_v50 = vpop.permute.xlu0 %249 }
  0xba   :  { %v325_v51 = vmul.f32 %v255_v49, %v69_v45  ;;  %v326_v52 = vmul.f32 %v255_v49, %v70_v46  ;;  %v323_v53 = vmul.f32 %v250_v50, %v67_v47  ;;  %v324_v54 = vmul.f32 %v250_v50, %v68_v48 }
  0xbc   :  { %389 = vst [vmem:[%s900_s2 + $0x1d0] sm:$0xff] %v325_v51  ;;  %390 = vst [vmem:[%s900_s2 + $0x1d8] sm:$0xff] %v326_v52 }
  0xbd   :  { %387 = vst [vmem:[%s900_s2 + $0x1c0] sm:$0xff] %v323_v53  ;;  %388 = vst [vmem:[%s900_s2 + $0x1c8] sm:$0xff] %v324_v54  ;;  %v265_v59 = vpop.permute.xlu1 %264  ;;  %v260_v60 = vpop.permute.xlu0 %259 }
  0xbe   :  { %v329_v61 = vmul.f32 %v265_v59, %v73_v55  ;;  %v330_v62 = vmul.f32 %v265_v59, %v74_v56  ;;  %v327_v63 = vmul.f32 %v260_v60, %v71_v57  ;;  %v328_v0 = vmul.f32 %v260_v60, %v72_v58 }
  0xc0   :  { %393 = vst [vmem:[%s900_s2 + $0x1f0] sm:$0xff] %v329_v61  ;;  %394 = vst [vmem:[%s900_s2 + $0x1f8] sm:$0xff] %v330_v62 }
  0xc1   :  { %391 = vst [vmem:[%s900_s2 + $0x1e0] sm:$0xff] %v327_v63  ;;  %392 = vst [vmem:[%s900_s2 + $0x1e8] sm:$0xff] %v328_v0 }

// kernel: channel_attention.2
= control target key start
LH: loop header
LB: loop body
LE: loop exit
PB: predicated region body
PF: predicated region fallthrough
CT: control target
= control target key end

     0   :  { %s2183_s12 = smov 0   ;;  %s2185_s13 = smov 0   ;;  %s2626_s0 = inlined_call_operand.vmem [shape: f32[2,128,256], index: 0, kind: input, shape index: {}]   ;;  %s2627_s1 = inlined_call_operand.vmem [shape: f32[128,8], index: 1, kind: input, shape index: {}]   ;;  %s2628_s2 = inlined_call_operand.vmem [shape: f32[8,128], index: 2, kind: input, shape index: {}]   ;;  %s2629_s3 = inlined_call_operand.vmem [shape: f32[2,1,128], index: 3, kind: output, shape index: {}]  }
   0x1   :  { %s2187_s14 = smov 0  }
   0x2 LB: > { %s25_s15 = sadd.s32 1, %s2152_s13  ;;  %p2008_p0 = scmp.ge.s32.totalorder %s2156_s14, 1  ;;  %s2156_s14 = sphi %s2187_s14, %s13_s14   ;;  %s2152_s13 = sphi %s2185_s13, %s2631_s13   ;;  %s2148_s12 = sphi %s2183_s12, %s2630_s12  }
   0x3   : > { %p27_p1 = scmp.ge.s32.totalorder %s25_s15, 2  ;;  %p156_p2 = scmp.lt.s32.totalorder %s2156_s14, 3 }
   0x5   : > { %s2633_s15 = smov (%p27_p1, %s25_s15), 0  ;;  %p157_p3 = pnand %p2008_p0, %p156_p2 }
   0x6   : > { %p183_p4 = scmp.lt.s32.totalorder (!%p157_p3), %s2148_s12, 1  ;;  %v2158_v46 = vmov (!%p157_p3), 0   ;;  %v297_v49 = vlaneseq (!%p157_p3)  ;;  %v2159_v50 = vmov (!%p157_p3), 1966171168   ;;  %vm2162_vm0 = vmmov (!%p157_p3), 0  }
   0x7   : > { %160 = sbr.rel (%p157_p3) target bundleno = 854 (0x356), region = 32  ;;  %2128 = vset.pattern.permute.xlu0 (!%p157_p3), %v2158_v46  ;;  %2129 = vset.pattern.permute.xlu1 (!%p157_p3), %v2158_v46  ;;  %v814_v51 = vunpack.c.l.s4 (!%p157_p3), %v2159_v50  ;;  %vm1652_vm1 = vcmask (!%p157_p3), 130112   ;;  %vm1659_vm2 = vcmask (!%p157_p3), 195712   ;;  %vm1666_vm3 = vcmask (!%p157_p3), 261312  }
   0x8   : > { %v2242_v52 = vshrl.u32 (!%p157_p3), %v297_v49, 7  ;;  %vm1673_vm4 = vcmask (!%p157_p3), 326912   ;;  %vm1680_vm5 = vcmask (!%p157_p3), 392512   ;;  %vm1687_vm6 = vcmask (!%p157_p3), 458112  }
   0x9   : > { %v815_v53 = vunpack.c.0.s8 (!%p157_p3), %v814_v51  ;;  %vm1694_vm7 = vcmask (!%p157_p3), 523712   ;;  %vm1701_vm8 = vcmask (!%p157_p3), 589312   ;;  %vm1708_vm9 = vcmask (!%p157_p3), 654912  }
   0xa   : > { %v2245_v54 = vsub.s32 (!%p157_p3), 0, %v2242_v52  ;;  %v2248_v55 = vsub.s32 (!%p157_p3), 1, %v2242_v52  ;;  %v2251_v56 = vsub.s32 (!%p157_p3), 2, %v2242_v52  ;;  %v2254_v57 = vsub.s32 (!%p157_p3), 3, %v2242_v52 }
   0xb   : > { %v2257_v58 = vsub.s32 (!%p157_p3), 4, %v2242_v52  ;;  %v2260_v59 = vsub.s32 (!%p157_p3), 5, %v2242_v52  ;;  %v2263_v60 = vsub.s32 (!%p157_p3), 6, %v2242_v52  ;;  %v2266_v61 = vsub.s32 (!%p157_p3), 7, %v2242_v52 }
   0xc   : > { %v2269_v63 = vsub.s32 (!%p157_p3), %v815_v53, %v2242_v52  ;;  %vm1715_vm10 = vcmask (!%p157_p3), 720512   ;;  %vm1722_vm11 = vcmask (!%p157_p3), 786112   ;;  %vm1729_vm12 = vcmask (!%p157_p3), 851712  }
   0xd   : > { %vm1736_vm13 = vcmask (!%p157_p3), 917312   ;;  %vm1743_vm14 = vcmask (!%p157_p3), 982912   ;;  %vm1750_vm15 = vcmask (!%p157_p3), 1048512  }
   0xe   : > { %s2635_s12 = smov (!%p183_p4, %s2148_s12), 1 }
   0xf   : > { %s2015_s16 = sshll.u32 %s2635_s12, 8  ;;  %s194_s6 = scalar_lea.vmem %s2629_s3, %s2635_s12 }
  0x10   : > { %s2207_s19 = scalar_lea.vmem %s2626_s0, %s2015_s16 }
  0x11   : > { %v201_v0 = vld [vmem:[%s2207_s19] sm:$0xff]  ;;  %v202_v1 = vld [vmem:[%s2207_s19 + $0x8] sm:$0xff]  ;;  %v203_v5 = vld [vmem:[%s2207_s19 + $0x10] sm:$0xff] }
  0x12   : > { %v205_v2 = vld [vmem:[%s2207_s19 + $0x20] sm:$0xff]  ;;  %v233_v3 = vadd.f32 %v202_v1, %v201_v0  ;;  %v206_v4 = vld [vmem:[%s2207_s19 + $0x28] sm:$0xff]  ;;  %v204_v6 = vld [vmem:[%s2207_s19 + $0x18] sm:$0xff] }
  0x13   : > { %v239_v7 = vadd.f32 %v206_v4, %v205_v2  ;;  %v207_v8 = vld [vmem:[%s2207_s19 + $0x30] sm:$0xff]  ;;  %v208_v9 = vld [vmem:[%s2207_s19 + $0x38] sm:$0xff]  ;;  %v236_v10 = vadd.f32 %v204_v6, %v203_v5  ;;  %v209_v12 = vld [vmem:[%s2207_s19 + $0x40] sm:$0xff] }
  0x14   : > { %234 = vadd.xlane.f32.xlu0 %v233_v3  ;;  %v242_v11 = vadd.f32 %v208_v9, %v207_v8  ;;  %v210_v13 = vld [vmem:[%s2207_s19 + $0x48] sm:$0xff]  ;;  %v211_v14 = vld [vmem:[%s2207_s19 + $0x50] sm:$0xff]  ;;  %v212_v15 = vld [vmem:[%s2207_s19 + $0x58] sm:$0xff] }
  0x15   : > { %240 = vadd.xlane.f32.xlu1 %v239_v7  ;;  %v245_v16 = vadd.f32 %v210_v13, %v209_v12  ;;  %v248_v17 = vadd.f32 %v212_v15, %v211_v14  ;;  %v213_v18 = vld [vmem:[%s2207_s19 + $0x60] sm:$0xff]  ;;  %v214_v19 = vld [vmem:[%s2207_s19 + $0x68] sm:$0xff]  ;;  %v215_v20 = vld [vmem:[%s2207_s19 + $0x70] sm:$0xff] }
  0x16   : > { %v216_v21 = vld [vmem:[%s2207_s19 + $0x78] sm:$0xff]  ;;  %v251_v22 = vadd.f32 %v214_v19, %v213_v18  ;;  %v217_v24 = vld [vmem:[%s2207_s19 + $0x80] sm:$0xff]  ;;  %v218_v25 = vld [vmem:[%s2207_s19 + $0x88] sm:$0xff] }
  0x17   : > { %v254_v23 = vadd.f32 %v216_v21, %v215_v20  ;;  %v219_v26 = vld [vmem:[%s2207_s19 + $0x90] sm:$0xff]  ;;  %v220_v27 = vld [vmem:[%s2207_s19 + $0x98] sm:$0xff]  ;;  %v257_v28 = vadd.f32 %v218_v25, %v217_v24  ;;  %v221_v30 = vld [vmem:[%s2207_s19 + $0xa0] sm:$0xff] }
  0x18   : > { %237 = vadd.xlane.f32.xlu0 %v236_v10  ;;  %v260_v29 = vadd.f32 %v220_v27, %v219_v26  ;;  %v222_v31 = vld [vmem:[%s2207_s19 + $0xa8] sm:$0xff]  ;;  %v223_v32 = vld [vmem:[%s2207_s19 + $0xb0] sm:$0xff]  ;;  %v224_v33 = vld [vmem:[%s2207_s19 + $0xb8] sm:$0xff] }
  0x19   : > { %243 = vadd.xlane.f32.xlu1 %v242_v11  ;;  %v263_v34 = vadd.f32 %v222_v31, %v221_v30  ;;  %v266_v35 = vadd.f32 %v224_v33, %v223_v32  ;;  %v225_v36 = vld [vmem:[%s2207_s19 + $0xc0] sm:$0xff]  ;;  %v226_v37 = vld [vmem:[%s2207_s19 + $0xc8] sm:$0xff]  ;;  %v227_v38 = vld [vmem:[%s2207_s19 + $0xd0] sm:$0xff] }
  0x1a   : > { %v228_v39 = vld [vmem:[%s2207_s19 + $0xd8] sm:$0xff]  ;;  %v269_v40 = vadd.f32 %v226_v37, %v225_v36  ;;  %v229_v42 = vld [vmem:[%s2207_s19 + $0xe0] sm:$0xff]  ;;  %v230_v43 = vld [vmem:[%s2207_s19 + $0xe8] sm:$0xff] }
  0x1b   : > { %v272_v41 = vadd.f32 %v228_v39, %v227_v38  ;;  %v231_v44 = vld [vmem:[%s2207_s19 + $0xf0] sm:$0xff]  ;;  %v232_v45 = vld [vmem:[%s2207_s19 + $0xf8] sm:$0xff]  ;;  %v275_v47 = vadd.f32 %v230_v43, %v229_v42 }
  0x1c   : > { %246 = vadd.xlane.f32.xlu0 %v245_v16  ;;  %v278_v48 = vadd.f32 %v232_v45, %v231_v44 }
  0x1d   : > { %249 = vadd.xlane.f32.xlu1 %v248_v17 }
  0x20   : > { %252 = vadd.xlane.f32.xlu0 %v251_v22 }
  0x21   : > { %255 = vadd.xlane.f32.xlu1 %v254_v23 }
  0x24   : > { %258 = vadd.xlane.f32.xlu0 %v257_v28 }
  0x25   : > { %261 = vadd.xlane.f32.xlu1 %v260_v29 }
  0x28   : > { %264 = vadd.xlane.f32.xlu0 %v263_v34 }
  0x29   : > { %267 = vadd.xlane.f32.xlu1 %v266_v35 }
  0x2c   : > { %270 = vadd.xlane.f32.xlu0 %v269_v40 }
  0x2d   : > { %273 = vadd.xlane.f32.xlu1 %v272_v41 }
  0x30   : > { %276 = vadd.xlane.f32.xlu0 %v275_v47 }
  0x31   : > { %279 = vadd.xlane.f32.xlu1 %v278_v48 }
  0xa1   : > { %v235_v62 = vpop.xlane.xlu0 %234 }
  0xa2   : > { %v241_v0 = vpop.xlane.xlu1 %240  ;;  %v300_v1 = vrot.slane %v235_v62, %v2245_v54  ;;  %v304_v2 = vrot.slane %v235_v62, %v2248_v55  ;;  %v308_v3 = vrot.slane %v235_v62, %v2251_v56  ;;  %v312_v4 = vrot.slane %v235_v62, %v2254_v57 }
  0xa3   : > { %v316_v5 = vrot.slane %v235_v62, %v2257_v58  ;;  %v320_v6 = vrot.slane %v235_v62, %v2260_v59  ;;  %v324_v7 = vrot.slane %v235_v62, %v2263_v60  ;;  %v328_v8 = vrot.slane %v235_v62, %v2266_v61 }
  0xa4   : > { %v809_v9 = vcombine.low %v300_v1, %v304_v2  ;;  %v810_v10 = vcombine.low %v308_v3, %v312_v4  ;;  %v364_v11 = vrot.slane %v241_v0, %v2245_v54  ;;  %v368_v12 = vrot.slane %v241_v0, %v2248_v55 }
  0xa5   : > { %v238_v13 = vpop.xlane.xlu0 %237  ;;  %v811_v14 = vcombine.low %v316_v5, %v320_v6  ;;  %v812_v15 = vcombine.low %v324_v7, %v328_v8  ;;  %v372_v16 = vrot.slane %v241_v0, %v2251_v56  ;;  %v376_v17 = vrot.slane %v241_v0, %v2254_v57 }
  0xa6   : > { %v2283_v18 = vpop.xlane.xlu1 %243  ;;  %v819_v19 = vrot.slane %v809_v9, %v2269_v63  ;;  %v826_v20 = vrot.slane %v810_v10, %v2269_v63  ;;  %v332_v21 = vrot.slane %v238_v13, %v2245_v54  ;;  %v336_v22 = vrot.slane %v238_v13, %v2248_v55 }
  0xa7   : > { %v833_v23 = vrot.slane %v811_v14, %v2269_v63  ;;  %v840_v24 = vrot.slane %v812_v15, %v2269_v63  ;;  %v340_v25 = vrot.slane %v238_v13, %v2251_v56  ;;  %v344_v26 = vrot.slane %v238_v13, %v2254_v57 }
  0xa8   : > { %v841_v27 = vcombine.low %v819_v19, %v826_v20  ;;  %v348_v28 = vrot.slane %v238_v13, %v2257_v58  ;;  %v352_v29 = vrot.slane %v238_v13, %v2260_v59  ;;  %v356_v30 = vrot.slane %v238_v13, %v2263_v60 }
  0xa9   : > { %v842_v31 = vcombine.low %v833_v23, %v840_v24  ;;  %v360_v32 = vrot.slane %v238_v13, %v2266_v61  ;;  %v858_v33 = vcombine.low %v332_v21, %v336_v22  ;;  %v859_v34 = vcombine.low %v340_v25, %v344_v26 }
  0xaa   : > { %v2297_v35 = vpop.xlane.xlu1 %249  ;;  %v849_v36 = vrot.slane %v841_v27, %v2269_v63  ;;  %v860_v37 = vcombine.low %v348_v28, %v352_v29  ;;  %v380_v38 = vrot.slane %v241_v0, %v2257_v58  ;;  %v384_v39 = vrot.slane %v241_v0, %v2260_v59 }
  0xab   : > { %v856_v40 = vrot.slane %v842_v31, %v2269_v63  ;;  %v861_v41 = vcombine.low %v356_v30, %v360_v32  ;;  %v868_v42 = vrot.slane %v858_v33, %v2269_v63  ;;  %v875_v43 = vrot.slane %v859_v34, %v2269_v63 }
  0xac   : > { %v882_v44 = vrot.slane %v860_v37, %v2269_v63  ;;  %v388_v45 = vrot.slane %v241_v0, %v2263_v60  ;;  %v392_v46 = vrot.slane %v241_v0, %v2266_v61  ;;  %v907_v47 = vcombine.low %v364_v11, %v368_v12  ;;  %v247_v12 = vpop.xlane.xlu0 %246 }
  0xad   : > { %v857_v48 = vcombine.low %v849_v36, %v856_v40  ;;  %v889_v50 = vrot.slane %v861_v41, %v2269_v63  ;;  %v890_v51 = vcombine.low %v868_v42, %v875_v43  ;;  %v908_v53 = vcombine.low %v372_v16, %v376_v17 }
  0xae   : > { %v909_v62 = vcombine.low %v380_v38, %v384_v39  ;;  %v910_v1 = vcombine.low %v388_v45, %v392_v46  ;;  %v917_v2 = vrot.slane %v907_v47, %v2269_v63  ;;  %v396_v3 = vrot.slane %v2283_v18, %v2245_v54  ;;  %v2312_v4 = vpop.xlane.xlu1 %255 }
  0xaf   : > { %1594 = vperm.xlu0 %2128, %v857_v48   ;;  %v891_v5 = vcombine.low %v882_v44, %v889_v50  ;;  %v898_v6 = vrot.slane %v890_v51, %v2269_v63  ;;  %v924_v0 = vrot.slane %v908_v53, %v2269_v63  ;;  %v400_v7 = vrot.slane %v2283_v18, %v2248_v55 }
  0xb0   : > { %v931_v8 = vrot.slane %v909_v62, %v2269_v63  ;;  %v938_v9 = vrot.slane %v910_v1, %v2269_v63  ;;  %v404_v10 = vrot.slane %v2283_v18, %v2251_v56  ;;  %v408_v11 = vrot.slane %v2283_v18, %v2254_v57 }
  0xb1   : > { %v905_v13 = vrot.slane %v891_v5, %v2269_v63  ;;  %v939_v14 = vcombine.low %v917_v2, %v924_v0  ;;  %v412_v15 = vrot.slane %v2283_v18, %v2257_v58  ;;  %v416_v16 = vrot.slane %v2283_v18, %v2260_v59 }
  0xb2   : > { %v940_v17 = vcombine.low %v931_v8, %v938_v9  ;;  %v420_v19 = vrot.slane %v2283_v18, %v2263_v60  ;;  %v424_v20 = vrot.slane %v2283_v18, %v2266_v61  ;;  %v956_v21 = vcombine.low %v396_v3, %v400_v7  ;;  %v262_v30 = vpop.xlane.xlu1 %261 }
  0xb3   : > { %v906_v22 = vcombine.low %v898_v6, %v905_v13  ;;  %v947_v23 = vrot.slane %v939_v14, %v2269_v63  ;;  %v957_v24 = vcombine.low %v404_v10, %v408_v11  ;;  %v958_v25 = vcombine.low %v412_v15, %v416_v16 }
  0xb4   : > { %v954_v26 = vrot.slane %v940_v17, %v2269_v63  ;;  %v959_v27 = vcombine.low %v420_v19, %v424_v20  ;;  %v966_v28 = vrot.slane %v956_v21, %v2269_v63  ;;  %v428_v29 = vrot.slane %v247_v12, %v2245_v54 }
  0xb5   : > { %1597 = vperm.xlu1 %2129, %v906_v22   ;;  %v973_v31 = vrot.slane %v957_v24, %v2269_v63  ;;  %v980_v32 = vrot.slane %v958_v25, %v2269_v63  ;;  %v432_v18 = vrot.slane %v247_v12, %v2248_v55  ;;  %v436_v33 = vrot.slane %v247_v12, %v2251_v56 }
  0xb6   : > { %v955_v34 = vcombine.low %v947_v23, %v954_v26  ;;  %v987_v36 = vrot.slane %v959_v27, %v2269_v63  ;;  %v440_v37 = vrot.slane %v247_v12, %v2254_v57  ;;  %v444_v38 = vrot.slane %v247_v12, %v2257_v58  ;;  %v268_v24 = vpop.xlane.xlu1 %267 }
  0xb7   : > { %v988_v39 = vcombine.low %v966_v28, %v973_v31  ;;  %v448_v40 = vrot.slane %v247_v12, %v2260_v59  ;;  %v452_v41 = vrot.slane %v247_v12, %v2263_v60  ;;  %v456_v42 = vrot.slane %v247_v12, %v2266_v61 }
  0xb8   : > { %v989_v43 = vcombine.low %v980_v32, %v987_v36  ;;  %v1005_v44 = vcombine.low %v428_v29, %v432_v18  ;;  %v1006_v45 = vcombine.low %v436_v33, %v440_v37  ;;  %v588_v46 = vrot.slane %v262_v30, %v2245_v54 }
  0xb9   : > { %1600 = vperm.xlu1 %2129, %v955_v34   ;;  %v996_v47 = vrot.slane %v988_v39, %v2269_v63  ;;  %v1007_v48 = vcombine.low %v444_v38, %v448_v40  ;;  %v1008_v50 = vcombine.low %v452_v41, %v456_v42  ;;  %v592_v51 = vrot.slane %v262_v30, %v2248_v55 }
  0xba   : > { %v1003_v53 = vrot.slane %v989_v43, %v2269_v63  ;;  %v1015_v62 = vrot.slane %v1005_v44, %v2269_v63  ;;  %v1022_v1 = vrot.slane %v1006_v45, %v2269_v63  ;;  %v596_v2 = vrot.slane %v262_v30, %v2251_v56 }
  0xbb   : > { %v1029_v3 = vrot.slane %v1007_v48, %v2269_v63  ;;  %v1036_v5 = vrot.slane %v1008_v50, %v2269_v63  ;;  %v600_v6 = vrot.slane %v262_v30, %v2254_v57  ;;  %v604_v0 = vrot.slane %v262_v30, %v2257_v58  ;;  %v253_v48 = vpop.xlane.xlu0 %252 }
  0xbc   : > { %v1004_v7 = vcombine.low %v996_v47, %v1003_v53  ;;  %v1037_v8 = vcombine.low %v1015_v62, %v1022_v1  ;;  %v608_v9 = vrot.slane %v262_v30, %v2260_v59  ;;  %v612_v10 = vrot.slane %v262_v30, %v2263_v60 }
  0xbd   : > { %v1038_v11 = vcombine.low %v1029_v3, %v1036_v5  ;;  %v616_v12 = vrot.slane %v262_v30, %v2266_v61  ;;  %v1250_v13 = vcombine.low %v588_v46, %v592_v51  ;;  %v1251_v14 = vcombine.low %v596_v2, %v600_v6 }
  0xbe   : > { %1603 = vperm.xlu1 %2129, %v1004_v7   ;;  %v1045_v15 = vrot.slane %v1037_v8, %v2269_v63  ;;  %v1252_v16 = vcombine.low %v604_v0, %v608_v9  ;;  %v460_v17 = vrot.slane %v2297_v35, %v2245_v54  ;;  %v464_v19 = vrot.slane %v2297_v35, %v2248_v55 }
  0xbf   : > { %v1052_v20 = vrot.slane %v1038_v11, %v2269_v63  ;;  %v1253_v21 = vcombine.low %v612_v10, %v616_v12  ;;  %v1260_v22 = vrot.slane %v1250_v13, %v2269_v63  ;;  %v1267_v23 = vrot.slane %v1251_v14, %v2269_v63 }
  0xc0   : > { %v1274_v25 = vrot.slane %v1252_v16, %v2269_v63  ;;  %v468_v26 = vrot.slane %v2297_v35, %v2251_v56  ;;  %v472_v27 = vrot.slane %v2297_v35, %v2254_v57  ;;  %v476_v28 = vrot.slane %v2297_v35, %v2257_v58 }
  0xc1   : > { %v1053_v29 = vcombine.low %v1045_v15, %v1052_v20  ;;  %v1281_v30 = vrot.slane %v1253_v21, %v2269_v63  ;;  %v1282_v31 = vcombine.low %v1260_v22, %v1267_v23  ;;  %v480_v32 = vrot.slane %v2297_v35, %v2260_v59 }
  0xc2   : > { %v484_v18 = vrot.slane %v2297_v35, %v2263_v60  ;;  %v488_v33 = vrot.slane %v2297_v35, %v2266_v61  ;;  %v1054_v34 = vcombine.low %v460_v17, %v464_v19  ;;  %v1055_v36 = vcombine.low %v468_v26, %v472_v27  ;;  %v274_v17 = vpop.xlane.xlu1 %273 }
  0xc3   : > { %1606 = vperm.xlu1 %2129, %v1053_v29   ;;  %v1283_v37 = vcombine.low %v1274_v25, %v1281_v30  ;;  %v1290_v38 = vrot.slane %v1282_v31, %v2269_v63  ;;  %v1056_v39 = vcombine.low %v476_v28, %v480_v32  ;;  %v652_v40 = vrot.slane %v268_v24, %v2245_v54 }
  0xc4   : > { %v1057_v41 = vcombine.low %v484_v18, %v488_v33  ;;  %v1064_v42 = vrot.slane %v1054_v34, %v2269_v63  ;;  %v1071_v43 = vrot.slane %v1055_v36, %v2269_v63  ;;  %v656_v44 = vrot.slane %v268_v24, %v2248_v55 }
  0xc5   : > { %v1297_v45 = vrot.slane %v1283_v37, %v2269_v63  ;;  %v1078_v35 = vrot.slane %v1056_v39, %v2269_v63  ;;  %v660_v46 = vrot.slane %v268_v24, %v2251_v56  ;;  %v664_v47 = vrot.slane %v268_v24, %v2254_v57 }
  0xc6   : > { %v1085_v50 = vrot.slane %v1057_v41, %v2269_v63  ;;  %v1086_v51 = vcombine.low %v1064_v42, %v1071_v43  ;;  %v668_v53 = vrot.slane %v268_v24, %v2257_v58  ;;  %v672_v62 = vrot.slane %v268_v24, %v2260_v59 }
  0xc7   : > { %v1298_v1 = vcombine.low %v1290_v38, %v1297_v45  ;;  %v676_v2 = vrot.slane %v268_v24, %v2263_v60  ;;  %v680_v3 = vrot.slane %v268_v24, %v2266_v61  ;;  %v1348_v5 = vcombine.low %v652_v40, %v656_v44 }
  0xc8   : > { %v1087_v6 = vcombine.low %v1078_v35, %v1085_v50  ;;  %v1094_v0 = vrot.slane %v1086_v51, %v2269_v63  ;;  %v1349_v7 = vcombine.low %v660_v46, %v664_v47  ;;  %v1350_v8 = vcombine.low %v668_v53, %v672_v62 }
  0xc9   : > { %1621 = vperm.xlu0 %2128, %v1298_v1   ;;  %v1351_v9 = vcombine.low %v676_v2, %v680_v3  ;;  %v1358_v10 = vrot.slane %v1348_v5, %v2269_v63  ;;  %v492_v11 = vrot.slane %v253_v48, %v2245_v54  ;;  %v496_v12 = vrot.slane %v253_v48, %v2248_v55 }
  0xca   : > { %v1101_v13 = vrot.slane %v1087_v6, %v2269_v63  ;;  %v1365_v14 = vrot.slane %v1349_v7, %v2269_v63  ;;  %v1372_v15 = vrot.slane %v1350_v8, %v2269_v63  ;;  %v500_v16 = vrot.slane %v253_v48, %v2251_v56 }
  0xcb   : > { %v1379_v19 = vrot.slane %v1351_v9, %v2269_v63  ;;  %v504_v20 = vrot.slane %v253_v48, %v2254_v57  ;;  %v508_v21 = vrot.slane %v253_v48, %v2257_v58  ;;  %v512_v22 = vrot.slane %v253_v48, %v2260_v59 }
  0xcc   : > { %v1102_v23 = vcombine.low %v1094_v0, %v1101_v13  ;;  %v1380_v24 = vcombine.low %v1358_v10, %v1365_v14  ;;  %v516_v25 = vrot.slane %v253_v48, %v2263_v60  ;;  %v520_v26 = vrot.slane %v253_v48, %v2266_v61  ;;  %v280_v0 = vpop.xlane.xlu1 %279 }
  0xcd   : > { %v1381_v27 = vcombine.low %v1372_v15, %v1379_v19  ;;  %v1103_v28 = vcombine.low %v492_v11, %v496_v12  ;;  %v1104_v29 = vcombine.low %v500_v16, %v504_v20  ;;  %v1105_v30 = vcombine.low %v508_v21, %v512_v22  ;;  %v259_v20 = vpop.xlane.xlu0 %258 }
  0xce   : > { %1609 = vperm.xlu1 %2129, %v1102_v23   ;;  %v1388_v31 = vrot.slane %v1380_v24, %v2269_v63  ;;  %v1106_v32 = vcombine.low %v516_v25, %v520_v26  ;;  %v716_v18 = vrot.slane %v274_v17, %v2245_v54  ;;  %v720_v33 = vrot.slane %v274_v17, %v2248_v55 }
  0xcf   : > { %v1395_v34 = vrot.slane %v1381_v27, %v2269_v63  ;;  %v1113_v36 = vrot.slane %v1103_v28, %v2269_v63  ;;  %v1120_v37 = vrot.slane %v1104_v29, %v2269_v63  ;;  %v1127_v38 = vrot.slane %v1105_v30, %v2269_v63 }
  0xd0   : > { %v1134_v39 = vrot.slane %v1106_v32, %v2269_v63  ;;  %v724_v40 = vrot.slane %v274_v17, %v2251_v56  ;;  %v728_v41 = vrot.slane %v274_v17, %v2254_v57  ;;  %v732_v42 = vrot.slane %v274_v17, %v2257_v58 }
  0xd1   : > { %v1396_v43 = vcombine.low %v1388_v31, %v1395_v34  ;;  %v1135_v44 = vcombine.low %v1113_v36, %v1120_v37  ;;  %v736_v45 = vrot.slane %v274_v17, %v2260_v59  ;;  %v740_v35 = vrot.slane %v274_v17, %v2263_v60 }
  0xd2   : > { %v1136_v46 = vcombine.low %v1127_v38, %v1134_v39  ;;  %v744_v47 = vrot.slane %v274_v17, %v2266_v61  ;;  %v1446_v48 = vcombine.low %v716_v18, %v720_v33  ;;  %v1447_v50 = vcombine.low %v724_v40, %v728_v41 }
  0xd3   : > { %1627 = vperm.xlu0 %2128, %v1396_v43   ;;  %v1143_v51 = vrot.slane %v1135_v44, %v2269_v63  ;;  %v1448_v53 = vcombine.low %v732_v42, %v736_v45  ;;  %v524_v62 = vrot.slane %v2312_v4, %v2245_v54  ;;  %v528_v1 = vrot.slane %v2312_v4, %v2248_v55  ;;  %v265_v44 = vpop.xlane.xlu0 %264 }
  0xd4   : > { %v1150_v2 = vrot.slane %v1136_v46, %v2269_v63  ;;  %v1449_v3 = vcombine.low %v740_v35, %v744_v47  ;;  %v1456_v5 = vrot.slane %v1446_v48, %v2269_v63  ;;  %v1463_v6 = vrot.slane %v1447_v50, %v2269_v63 }
  0xd5   : > { %v1470_v7 = vrot.slane %v1448_v53, %v2269_v63  ;;  %v532_v8 = vrot.slane %v2312_v4, %v2251_v56  ;;  %v536_v9 = vrot.slane %v2312_v4, %v2254_v57  ;;  %v540_v10 = vrot.slane %v2312_v4, %v2257_v58 }
  0xd6   : > { %v1151_v11 = vcombine.low %v1143_v51, %v1150_v2  ;;  %v1477_v12 = vrot.slane %v1449_v3, %v2269_v63  ;;  %v1478_v13 = vcombine.low %v1456_v5, %v1463_v6  ;;  %v544_v14 = vrot.slane %v2312_v4, %v2260_v59 }
  0xd7   : > { %v548_v15 = vrot.slane %v2312_v4, %v2263_v60  ;;  %v552_v16 = vrot.slane %v2312_v4, %v2266_v61  ;;  %v1152_v17 = vcombine.low %v524_v62, %v528_v1  ;;  %v1153_v19 = vcombine.low %v532_v8, %v536_v9 }
  0xd8   : > { %1612 = vperm.xlu1 %2129, %v1151_v11   ;;  %v1479_v21 = vcombine.low %v1470_v7, %v1477_v12  ;;  %v1486_v22 = vrot.slane %v1478_v13, %v2269_v63  ;;  %v1154_v23 = vcombine.low %v540_v10, %v544_v14  ;;  %v780_v24 = vrot.slane %v280_v0, %v2245_v54 }
  0xd9   : > { %v1155_v25 = vcombine.low %v548_v15, %v552_v16  ;;  %v1162_v26 = vrot.slane %v1152_v17, %v2269_v63  ;;  %v1169_v27 = vrot.slane %v1153_v19, %v2269_v63  ;;  %v784_v28 = vrot.slane %v280_v0, %v2248_v55  ;;  %v271_v16 = vpop.xlane.xlu0 %270 }
  0xda   : > { %v1493_v29 = vrot.slane %v1479_v21, %v2269_v63  ;;  %v1176_v4 = vrot.slane %v1154_v23, %v2269_v63  ;;  %v788_v30 = vrot.slane %v280_v0, %v2251_v56  ;;  %v792_v31 = vrot.slane %v280_v0, %v2254_v57 }
  0xdb   : > { %v1183_v32 = vrot.slane %v1155_v25, %v2269_v63  ;;  %v1184_v18 = vcombine.low %v1162_v26, %v1169_v27  ;;  %v796_v33 = vrot.slane %v280_v0, %v2257_v58  ;;  %v800_v34 = vrot.slane %v280_v0, %v2260_v59 }
  0xdc   : > { %v1494_v36 = vcombine.low %v1486_v22, %v1493_v29  ;;  %v804_v37 = vrot.slane %v280_v0, %v2263_v60  ;;  %v808_v38 = vrot.slane %v280_v0, %v2266_v61  ;;  %v1544_v39 = vcombine.low %v780_v24, %v784_v28 }
  0xdd   : > { %v1185_v40 = vcombine.low %v1176_v4, %v1183_v32  ;;  %v1192_v41 = vrot.slane %v1184_v18, %v2269_v63  ;;  %v1545_v42 = vcombine.low %v788_v30, %v792_v31  ;;  %v1546_v43 = vcombine.low %v796_v33, %v800_v34 }
  0xde   : > { %1633 = vperm.xlu0 %2128, %v1494_v36   ;;  %v1547_v45 = vcombine.low %v804_v37, %v808_v38  ;;  %v1554_v35 = vrot.slane %v1544_v39, %v2269_v63  ;;  %v556_v46 = vrot.slane %v259_v20, %v2245_v54  ;;  %v560_v47 = vrot.slane %v259_v20, %v2248_v55 }
  0xdf   : > { %v1199_v48 = vrot.slane %v1185_v40, %v2269_v63  ;;  %v1561_v50 = vrot.slane %v1545_v42, %v2269_v63  ;;  %v1568_v51 = vrot.slane %v1546_v43, %v2269_v63  ;;  %v564_v53 = vrot.slane %v259_v20, %v2251_v56 }
  0xe0   : > { %v1575_v62 = vrot.slane %v1547_v45, %v2269_v63  ;;  %v568_v1 = vrot.slane %v259_v20, %v2254_v57  ;;  %v572_v2 = vrot.slane %v259_v20, %v2257_v58  ;;  %v576_v3 = vrot.slane %v259_v20, %v2260_v59 }
  0xe1   : > { %v1200_v5 = vcombine.low %v1192_v41, %v1199_v48  ;;  %v1576_v6 = vcombine.low %v1554_v35, %v1561_v50  ;;  %v580_v0 = vrot.slane %v259_v20, %v2263_v60  ;;  %v584_v7 = vrot.slane %v259_v20, %v2266_v61  ;;  %v277_v41 = vpop.xlane.xlu0 %276 }
  0xe2   : > { %v1577_v8 = vcombine.low %v1568_v51, %v1575_v62  ;;  %v1201_v9 = vcombine.low %v556_v46, %v560_v47  ;;  %v1202_v10 = vcombine.low %v564_v53, %v568_v1  ;;  %v1203_v11 = vcombine.low %v572_v2, %v576_v3 }
  0xe3   : > { %1615 = vperm.xlu1 %2129, %v1200_v5   ;;  %v1584_v12 = vrot.slane %v1576_v6, %v2269_v63  ;;  %v1204_v13 = vcombine.low %v580_v0, %v584_v7  ;;  %v620_v14 = vrot.slane %v265_v44, %v2245_v54  ;;  %v624_v15 = vrot.slane %v265_v44, %v2248_v55 }
  0xe4   : > { %v1591_v17 = vrot.slane %v1577_v8, %v2269_v63  ;;  %v1211_v19 = vrot.slane %v1201_v9, %v2269_v63  ;;  %v1218_v21 = vrot.slane %v1202_v10, %v2269_v63  ;;  %v1225_v20 = vrot.slane %v1203_v11, %v2269_v63 }
  0xe5   : > { %v1232_v22 = vrot.slane %v1204_v13, %v2269_v63  ;;  %v628_v23 = vrot.slane %v265_v44, %v2251_v56  ;;  %v632_v24 = vrot.slane %v265_v44, %v2254_v57  ;;  %v636_v25 = vrot.slane %v265_v44, %v2257_v58 }
  0xe6   : > { %v1592_v26 = vcombine.low %v1584_v12, %v1591_v17  ;;  %v1233_v27 = vcombine.low %v1211_v19, %v1218_v21  ;;  %v640_v28 = vrot.slane %v265_v44, %v2260_v59  ;;  %v644_v29 = vrot.slane %v265_v44, %v2263_v60 }
  0xe7   : > { %v1234_v4 = vcombine.low %v1225_v20, %v1232_v22  ;;  %v648_v30 = vrot.slane %v265_v44, %v2266_v61  ;;  %v1299_v31 = vcombine.low %v620_v14, %v624_v15  ;;  %v1300_v32 = vcombine.low %v628_v23, %v632_v24 }
  0xe8   : > { %1639 = vperm.xlu0 %2128, %v1592_v26   ;;  %v1241_v18 = vrot.slane %v1233_v27, %v2269_v63  ;;  %v1301_v33 = vcombine.low %v636_v25, %v640_v28  ;;  %v684_v34 = vrot.slane %v271_v16, %v2245_v54  ;;  %v688_v36 = vrot.slane %v271_v16, %v2248_v55 }
  0xe9   : > { %v1248_v37 = vrot.slane %v1234_v4, %v2269_v63  ;;  %v1302_v38 = vcombine.low %v644_v29, %v648_v30  ;;  %v1309_v39 = vrot.slane %v1299_v31, %v2269_v63  ;;  %v1316_v40 = vrot.slane %v1300_v32, %v2269_v63  ;;  %v1774_v29 = vld [vmem:[%s2627_s1] sm:$0xff]  ;;  %v1775_v4 = vld [vmem:[%s2627_s1 + $0x8] sm:$0xff]  ;;  %v1776_v31 = vld [vmem:[%s2627_s1 + $0x10] sm:$0xff] }
  0xea   : > { %v1323_v42 = vrot.slane %v1301_v33, %v2269_v63  ;;  %v692_v43 = vrot.slane %v271_v16, %v2251_v56  ;;  %v696_v44 = vrot.slane %v271_v16, %v2254_v57  ;;  %v700_v45 = vrot.slane %v271_v16, %v2257_v58  ;;  %v1777_v32 = vld [vmem:[%s2627_s1 + $0x18] sm:$0xff] }
  0xeb   : > { %v1249_v35 = vcombine.low %v1241_v18, %v1248_v37  ;;  %v1330_v46 = vrot.slane %v1302_v38, %v2269_v63  ;;  %v1331_v47 = vcombine.low %v1309_v39, %v1316_v40  ;;  %v704_v48 = vrot.slane %v271_v16, %v2260_v59  ;;  %v1779_v37 = vld [vmem:[%s2627_s1 + $0x28] sm:$0xff]  ;;  %v1780_v40 = vld [vmem:[%s2627_s1 + $0x30] sm:$0xff] }
  0xec   : > { %v708_v50 = vrot.slane %v271_v16, %v2263_v60  ;;  %v712_v51 = vrot.slane %v271_v16, %v2266_v61  ;;  %v1397_v53 = vcombine.low %v684_v34, %v688_v36  ;;  %v1398_v62 = vcombine.low %v692_v43, %v696_v44  ;;  %v1778_v36 = vld [vmem:[%s2627_s1 + $0x20] sm:$0xff]  ;;  %v1783_v44 = vld [vmem:[%s2627_s1 + $0x48] sm:$0xff] }
  0xed   : > { %1618 = vperm.xlu1 %2129, %v1249_v35   ;;  %v1332_v1 = vcombine.low %v1323_v42, %v1330_v46  ;;  %v1339_v2 = vrot.slane %v1331_v47, %v2269_v63  ;;  %v1399_v3 = vcombine.low %v700_v45, %v704_v48  ;;  %v748_v5 = vrot.slane %v277_v41, %v2245_v54  ;;  %v1782_v43 = vld [vmem:[%s2627_s1 + $0x40] sm:$0xff]  ;;  %v1784_v35 = vld [vmem:[%s2627_s1 + $0x50] sm:$0xff]  ;;  %v1785_v46 = vld [vmem:[%s2627_s1 + $0x58] sm:$0xff] }
  0xee   : > { %v1400_v6 = vcombine.low %v708_v50, %v712_v51  ;;  %v1407_v0 = vrot.slane %v1397_v53, %v2269_v63  ;;  %v1414_v7 = vrot.slane %v1398_v62, %v2269_v63  ;;  %v752_v8 = vrot.slane %v277_v41, %v2248_v55  ;;  %v1786_v48 = vld [vmem:[%s2627_s1 + $0x60] sm:$0xff]  ;;  %v1787_v50 = vld [vmem:[%s2627_s1 + $0x68] sm:$0xff]  ;;  %v1788_v53 = vld [vmem:[%s2627_s1 + $0x70] sm:$0xff] }
  0xef   : > { %v1346_v9 = vrot.slane %v1332_v1, %v2269_v63  ;;  %v1421_v10 = vrot.slane %v1399_v3, %v2269_v63  ;;  %v756_v11 = vrot.slane %v277_v41, %v2251_v56  ;;  %v760_v12 = vrot.slane %v277_v41, %v2254_v57  ;;  %v1789_v62 = vld [vmem:[%s2627_s1 + $0x78] sm:$0xff] }
  0xf0   : > { %v1428_v13 = vrot.slane %v1400_v6, %v2269_v63  ;;  %v1429_v14 = vcombine.low %v1407_v0, %v1414_v7  ;;  %v764_v54 = vrot.slane %v277_v41, %v2257_v58  ;;  %v768_v15 = vrot.slane %v277_v41, %v2260_v59 }
  0xf1   : > { %v1347_v16 = vcombine.low %v1339_v2, %v1346_v9  ;;  %v772_v17 = vrot.slane %v277_v41, %v2263_v60  ;;  %v776_v55 = vrot.slane %v277_v41, %v2266_v61  ;;  %v1495_v19 = vcombine.low %v748_v5, %v752_v8  ;;  %v1781_v41 = vld [vmem:[%s2627_s1 + $0x38] sm:$0xff] }
  0xf2   : > { %v1430_v21 = vcombine.low %v1421_v10, %v1428_v13  ;;  %v1437_v20 = vrot.slane %v1429_v14, %v2269_v63  ;;  %v1496_v22 = vcombine.low %v756_v11, %v760_v12  ;;  %v1497_v56 = vcombine.low %v764_v54, %v768_v15 }
  0xf3   : > { %1624 = vperm.xlu1 %2129, %v1347_v16   ;;  %v1498_v57 = vcombine.low %v772_v17, %v776_v55  ;;  %v1505_v23 = vrot.slane %v1495_v19, %v2269_v63  ;;  %v2076_v18 = vpack.c.bf16 %v1775_v4, %v1774_v29  ;;  %v2160_v33 = vmov 0.0|0.0  }
  0xf4   : > { %v1444_v24 = vrot.slane %v1430_v21, %v2269_v63  ;;  %v1512_v58 = vrot.slane %v1496_v22, %v2269_v63  ;;  %v1519_v59 = vrot.slane %v1497_v56, %v2269_v63  ;;  %2075 = vmatprep.subr.bf16.mxu0 %v2160_v33  ;;  %v2079_v34 = vpack.c.bf16 %v1777_v32, %v1776_v31 }
  0xf5   : > { %v1526_v60 = vrot.slane %v1498_v57, %v2269_v63  ;;  %2077 = vmatpush3.bf16.msra.mxu0 %v2076_v18  ;;  %v2082_v38 = vpack.c.bf16 %v1779_v37, %v1778_v36  ;;  %v2161_v39 = vmov 0.0   ;;  %v2085_v42 = vpack.c.bf16 %v1781_v41, %v1780_v40 }
  0xf6   : > { %v1445_v25 = vcombine.low %v1437_v20, %v1444_v24  ;;  %v1527_v61 = vcombine.low %v1505_v23, %v1512_v58  ;;  %2078 = vmatprep.subr.bf16.mxu0 %v2160_v33  ;;  %199 = vst [vmem:[#allocation2] sm:$0x1] %v2161_v39  ;;  %2070 = vmatprep.subr.mxu1 %v2161_v39  ;;  %v2574_v7 = vand.u32 127, %v297_v49 }
  0xf7   : > { %v1528_v26 = vcombine.low %v1519_v59, %v1526_v60  ;;  %2067 = vmatprep.mubr.msk.f32.mxu0 %vm2162_vm0, %v2161_v39  ;;  %2072 = vmatprep.mubr.msk.f32.mxu1 %vm2162_vm0, %v2161_v39  ;;  %v2088_v45 = vpack.c.bf16 %v1783_v44, %v1782_v43  ;;  %v2091_v47 = vpack.c.bf16 %v1785_v46, %v1784_v35  ;;  %vm1862_vm0 = vcmask 64512  }
  0xf8   : > { %1630 = vperm.xlu1 %2129, %v1445_v25   ;;  %v1535_v27 = vrot.slane %v1527_v61, %v2269_v63  ;;  %v2094_v51 = vpack.c.bf16 %v1787_v50, %v1786_v48  ;;  %v2097_v1 = vpack.c.bf16 %v1789_v62, %v1788_v53  ;;  %v1647_v8 = vadd.s32 4294967288, %v2574_v7 }
  0xf9   : > { %v1542_v28 = vrot.slane %v1528_v26, %v2269_v63  ;;  %2080 = vmatpush3.bf16.msra.mxu0 %v2079_v34  ;;  %v1654_v10 = vadd.s32 4294967280, %v2574_v7  ;;  %v1661_v11 = vadd.s32 4294967272, %v2574_v7  ;;  %v1668_v12 = vadd.s32 4294967264, %v2574_v7 }
  0xfa   : > { %2081 = vmatprep.subr.bf16.mxu0 %v2160_v33  ;;  %v1650_v13 = vsub.s32 %v1647_v8, %v2242_v52  ;;  %v1675_v14 = vadd.s32 4294967256, %v2574_v7  ;;  %v1682_v16 = vadd.s32 4294967248, %v2574_v7  ;;  %v1645_v49 = vsub.s32 %v2574_v7, %v2242_v52 }
  0xfb   : > { %v1543_v30 = vcombine.low %v1535_v27, %v1542_v28  ;;  %v1657_v15 = vsub.s32 %v1654_v10, %v2242_v52  ;;  %v1664_v17 = vsub.s32 %v1661_v11, %v2242_v52  ;;  %v1689_v55 = vadd.s32 4294967240, %v2574_v7 }
  0xfc   : > { %v1671_v21 = vsub.s32 %v1668_v12, %v2242_v52  ;;  %v1696_v20 = vadd.s32 4294967232, %v2574_v7  ;;  %v1678_v56 = vsub.s32 %v1675_v14, %v2242_v52  ;;  %v1685_v24 = vsub.s32 %v1682_v16, %v2242_v52 }
  0xfd   : > { %1636 = vperm.xlu1 %2129, %v1543_v30   ;;  %2083 = vmatpush3.bf16.msra.mxu0 %v2082_v38  ;;  %v1692_v60 = vsub.s32 %v1689_v55, %v2242_v52  ;;  %v1710_v26 = vadd.s32 4294967216, %v2574_v7  ;;  %v1703_v28 = vadd.s32 4294967224, %v2574_v7  ;;  %v1717_v18 = vadd.s32 4294967208, %v2574_v7  ;;  %v200_v55 = vld [vmem:[#allocation2] sm:$0x1] }
  0xfe   : > { %2084 = vmatprep.subr.bf16.mxu0 %v2160_v33  ;;  %v1699_v61 = vsub.s32 %v1696_v20, %v2242_v52  ;;  %v1724_v41 = vadd.s32 4294967200, %v2574_v7  ;;  %v1738_v53 = vadd.s32 4294967184, %v2574_v7  ;;  %v1745_v62 = vadd.s32 4294967176, %v2574_v7 }
  0xff   : > { %v1713_v38 = vsub.s32 %v1710_v26, %v2242_v52  ;;  %v1706_v39 = vsub.s32 %v1703_v28, %v2242_v52  ;;  %v1720_v48 = vsub.s32 %v1717_v18, %v2242_v52 }
 0x100   : > { %v1727_v50 = vsub.s32 %v1724_v41, %v2242_v52  ;;  %v1741_v8 = vsub.s32 %v1738_v53, %v2242_v52 }
 0x101   : > { %2086 = vmatpush3.bf16.msra.mxu0 %v2085_v42 }
 0x102   : > { %2087 = vmatprep.subr.bf16.mxu0 %v2160_v33 }
 0x105   : > { %2089 = vmatpush3.bf16.msra.mxu0 %v2088_v45  ;;  %v1731_v45 = vadd.s32 4294967192, %v2574_v7 }
 0x106   : > { %2090 = vmatprep.subr.bf16.mxu0 %v2160_v33 }
 0x109   : > { %2092 = vmatpush3.bf16.msra.mxu0 %v2091_v47 }
 0x10a   : > { %2093 = vmatprep.subr.bf16.mxu0 %v2160_v33 }
 0x10d   : > { %2095 = vmatpush3.bf16.msra.mxu0 %v2094_v51 }
 0x10e   : > { %2096 = vmatprep.subr.bf16.mxu0 %v2160_v33 }
 0x111   : > { %2098 = vmatpush3.bf16.msra.mxu0 %v2097_v1 }
 0x12e   : > { %v1595_v54 = vpop.permute.xlu0 %1594 }
 0x12f   : > { %v1646_v58 = vrot.slane %v1595_v54, %v1645_v49 }
 0x134   : > { %v1598_v2 = vpop.permute.xlu1 %1597 }
 0x135   : > { %v1651_v22 = vrot.slane %v1598_v2, %v1650_v13 }
 0x137   : > { %v1653_v27 = vsel %vm1652_vm1, %v1651_v22, %v1646_v58  ;;  %v1861_v22 = vld [vmem:[%s2628_s2] sm:$0xff] }
 0x138   : > { %v1601_v3 = vpop.permute.xlu1 %1600  ;;  %2071 = vmatpush3.msra.mxu1 %v1861_v22 }
 0x139   : > { %v1658_v57 = vrot.slane %v1601_v3, %v1657_v15 }
 0x13b   : > { %v1660_v30 = vsel %vm1659_vm2, %v1658_v57, %v1653_v27 }
 0x13d   : > { %v1604_v5 = vpop.permute.xlu1 %1603 }
 0x13e   : > { %v1665_v59 = vrot.slane %v1604_v5, %v1664_v17 }
 0x140   : > { %v1667_v32 = vsel %vm1666_vm3, %v1665_v59, %v1660_v30 }
 0x142   : > { %v1607_v6 = vpop.permute.xlu1 %1606 }
 0x143   : > { %v1672_v25 = vrot.slane %v1607_v6, %v1671_v21  ;;  %v1734_v6 = vsub.s32 %v1731_v45, %v2242_v52 }
 0x145   : > { %v1674_v34 = vsel %vm1673_vm4, %v1672_v25, %v1667_v32 }
 0x148   : > { %v1622_v23 = vpop.permute.xlu0 %1621 }
 0x149   : > { %v1707_v47 = vrot.slane %v1622_v23, %v1706_v39 }
 0x14d   : > { %v1610_v0 = vpop.permute.xlu1 %1609 }
 0x14e   : > { %v1679_v29 = vrot.slane %v1610_v0, %v1678_v56 }
 0x150   : > { %v1681_v40 = vsel %vm1680_vm5, %v1679_v29, %v1674_v34 }
 0x152   : > { %v1628_v36 = vpop.permute.xlu0 %1627 }
 0x153   : > { %v1721_v5 = vrot.slane %v1628_v36, %v1720_v48 }
 0x157   : > { %v1613_v9 = vpop.permute.xlu1 %1612 }
 0x158   : > { %v1686_v31 = vrot.slane %v1613_v9, %v1685_v24  ;;  %v1748_v9 = vsub.s32 %v1745_v62, %v2242_v52 }
 0x15a   : > { %v1688_v42 = vsel %vm1687_vm6, %v1686_v31, %v1681_v40 }
 0x15d   : > { %v1634_v51 = vpop.permute.xlu0 %1633 }
 0x15e   : > { %v1735_v13 = vrot.slane %v1634_v51, %v1734_v6 }
 0x162   : > { %v1616_v19 = vpop.permute.xlu1 %1615 }
 0x163   : > { %v1693_v33 = vrot.slane %v1616_v19, %v1692_v60 }
 0x165   : > { %v1695_v43 = vsel %vm1694_vm7, %v1693_v33, %v1688_v42 }
 0x167   : > { %v1640_v11 = vpop.permute.xlu0 %1639 }
 0x168   : > { %v1749_v54 = vrot.slane %v1640_v11, %v1748_v9 }
 0x16c   : > { %v1619_v4 = vpop.permute.xlu1 %1618 }
 0x16d   : > { %v1700_v37 = vrot.slane %v1619_v4, %v1699_v61 }
 0x16f   : > { %v1702_v35 = vsel %vm1701_vm8, %v1700_v37, %v1695_v43 }
 0x170   : > { %v1709_v1 = vsel %vm1708_vm9, %v1707_v47, %v1702_v35 }
 0x172   : > { %v1625_v44 = vpop.permute.xlu1 %1624 }
 0x173   : > { %v1714_v46 = vrot.slane %v1625_v44, %v1713_v38 }
 0x175   : > { %v1716_v2 = vsel %vm1715_vm10, %v1714_v46, %v1709_v1 }
 0x176   : > { %v1723_v10 = vsel %vm1722_vm11, %v1721_v5, %v1716_v2 }
 0x177   : > { %v1631_v3 = vpop.permute.xlu1 %1630 }
 0x178   : > { %v1728_v0 = vrot.slane %v1631_v3, %v1727_v50 }
 0x17a   : > { %v1730_v12 = vsel %vm1729_vm12, %v1728_v0, %v1723_v10 }
 0x17b   : > { %v1737_v15 = vsel %vm1736_vm13, %v1735_v13, %v1730_v12 }
 0x17c   : > { %v1637_v7 = vpop.permute.xlu1 %1636 }
 0x17d   : > { %v1742_v14 = vrot.slane %v1637_v7, %v1741_v8 }
 0x17f   : > { %v1744_v16 = vsel %vm1743_vm14, %v1742_v14, %v1737_v15 }
 0x180   : > { %v1751_v49 = vsel %vm1750_vm15, %v1749_v54, %v1744_v16 }
 0x181   : > { %v1758_v17 = vrot.slane %v1751_v49, %v2269_v63 }
 0x183   : > { %v1765_v19 = vrot.slane %v1758_v17, %v2269_v63 }
 0x185   : > { %v1767_v21 = vadd.f32 %v1765_v19, %v200_v55 }
 0x187   : > { %1768 = vst [vmem:[#allocation2] sm:$0x1] %v1767_v21 }
 0x18e   : > { %v1772_v52 = vld [vmem:[#allocation2] sm:$0x1] }
 0x18f   : > { %v1773_v20 = vmul.f32 0.00390625, %v1772_v52 }
 0x191   : > { %2068 = vmatmul.mubr.f32.vlgmr.msra.gmra.mrb[0].mxu0 %v1773_v20 }
 0x264   : > { %v1856_v56 = vpop.f32.mrb[0].mxu0 }
 0x265   : > { %v1860_v57 = vmax.f32 %v1856_v56, 0.0  ;;  %v2069_v23 = vpop.f32.mrb[1].mxu0 }
 0x267   : > { %2073 = vmatmul.mubr.msk.f32.vlgmr.msra.gmra.mrb[0].mxu1 %vm1862_vm0, %v1860_v57 }
 0x33a   : > { %v1932_v24 = vpop.f32.mrb[0].mxu1 }
 0x33b   : > { %v2012_v58 = vmul.f32 -1.442695, %v1932_v24  ;;  %v2074_v59 = vpop.f32.mrb[1].mxu1 }
 0x33d   : > { %2130 = vpow2.f32 %v2012_v58 }
 0x347   : > { %v2131_v63 = vpop.eup %2130 }
 0x348   : > { %v1939_v60 = vadd.f32 1.0, %v2131_v63 }
 0x34a   : > { %2132 = vrcp.f32 %v1939_v60 }
 0x354   : > { %v2133_v25 = vpop.eup %2132 }
 0x355   : > { %1942 = vst [vmem:[%s194_s6] sm:$0x1] %v2133_v25 }
 0x356 PF: > { %s13_s14 = sadd.s32 1, %s2156_s14   ;;  %s2630_s12 = smov %s2152_s13 }
 0x357   : > { %p10_p5 = scmp.ge.s32.totalorder %s13_s14, 4   ;;  %s2631_s13 = smov %s2633_s15 }
 0x359   :  { %12 = sbr.rel (!%p10_p5) target bundleno = 2 (0x2), region = 70 }

</bundles_post_ra>
